<compile_context>
chip_gen: v6e
topology: v6e:2x2x1
jax: 0.10.0
libtpu: 0.0.40
codegen_flags: <defaults>
</compile_context>

<pallas_src>
import functools
import math

import jax
import jax.numpy as jnp
from jax import lax
from jax.experimental import pallas as pl
from jax.experimental.pallas import tpu as pltpu


def _round_up(x, m):
    return (x + m - 1) // m * m


# ----------------------------------------------------------------------------
# Kernel: one grid step = one encoder layer for one batch block.
# ----------------------------------------------------------------------------
def transformer_layer_kernel(
    x_ref,
    wqkv_ref, bqkv_ref, wo_ref, bo_ref,
    ln1g_ref, ln1b_ref,
    w1_ref, b1_ref, w2_ref, b2_ref,
    ln2g_ref, ln2b_ref,
    wc_ref, bc_ref,
    out_ref,
    xf_scr,
    *, num_heads, head_dim, seq_valid, seq_pad, batch_tile, compute_dtype,
):
    l = pl.program_id(1)
    H, D = num_heads, head_dim
    E = H * D
    B, S1P = batch_tile, seq_pad
    BM = B * S1P
    scale = float(D) ** -0.5

    # First layer of this batch block: load the (already assembled, padded)
    # embeddings into the persistent activation scratch.
    @pl.when(l == 0)
    def _():
        xf_scr[...] = x_ref[...]

    xf = xf_scr[...]                                         # (BM, E) f32

    def mm(a, w):
        # bf16 MXU operands, f32 accumulation.
        return jnp.dot(a.astype(compute_dtype), w.astype(compute_dtype),
                       preferred_element_type=jnp.float32)

    def layernorm(v, g, b):
        mu = jnp.mean(v, axis=-1, keepdims=True)
        var = jnp.mean(jnp.square(v - mu), axis=-1, keepdims=True)
        return (v - mu) * lax.rsqrt(var + 1e-5) * g + b

    # ---- fused QKV projection (batch folded into the MXU M dimension) ------
    qkv = mm(xf, wqkv_ref[0]) + bqkv_ref[0]                  # (BM, 3E) f32

    # Padded key rows (seq_valid..S1P-1) must not participate as keys.
    kidx = lax.broadcasted_iota(jnp.int32, (1, 1, S1P), 2)
    key_valid = kidx < seq_valid

    # ---- attention: batched over batch via 3-D einsums, static head loop ---
    head_outs = []
    for h in range(H):
        lo = h * D
        qh = qkv[:, lo:lo + D].reshape(B, S1P, D)
        kh = qkv[:, E + lo:E + lo + D].reshape(B, S1P, D)
        vh = qkv[:, 2 * E + lo:2 * E + lo + D].reshape(B, S1P, D)

        s = jnp.einsum('bqd,bkd->bqk',
                       qh.astype(compute_dtype), kh.astype(compute_dtype),
                       preferred_element_type=jnp.float32) * scale
        s = jnp.where(key_valid, s, -1e30)
        s = s - jnp.max(s, axis=-1, keepdims=True)
        p = jnp.exp(s)
        p = p * pl.reciprocal(jnp.sum(p, axis=-1, keepdims=True), approx=False)

        oh = jnp.einsum('bqk,bkd->bqd',
                        p.astype(compute_dtype), vh.astype(compute_dtype),
                        preferred_element_type=jnp.float32)
        head_outs.append(oh.reshape(BM, D))
    o = jnp.concatenate(head_outs, axis=-1)                  # (BM, E)

    # ---- output projection + residual + LayerNorm1 ----
    attn = mm(o, wo_ref[0]) + bo_ref[0]
    y = layernorm(attn + xf, ln1g_ref[0], ln1b_ref[0])

    # ---- feed-forward (Linear -> ReLU -> Linear) + residual + LayerNorm2 ---
    h1 = jnp.maximum(mm(y, w1_ref[0]) + b1_ref[0], 0.0)
    f2 = mm(h1, w2_ref[0]) + b2_ref[0]
    x_new = layernorm(f2 + y, ln2g_ref[0], ln2b_ref[0])
    xf_scr[...] = x_new

    # ---- CLS pooling + classifier at the last layer only -------------------
    @pl.when(l == pl.num_programs(1) - 1)
    def _():
        pooled = x_new.reshape(B, S1P, E)[:, 0, :]           # (B, E) CLS rows
        out_ref[...] = mm(pooled, wc_ref[...]) + bc_ref[...]


# ----------------------------------------------------------------------------
# Wrapper
# ----------------------------------------------------------------------------
def transformer_classifier_forward(token_ids, params, *, num_heads, num_classes,
                                   compute_dtype=jnp.bfloat16):
    # nn.Embedding lookup (data-dependent gather) stays in plain JAX.
    tokens = jnp.take(params["token_embedding"], token_ids, axis=0)   # (B, S, E)
    B, S, E = tokens.shape
    S1 = S + 1
    L = params["wqkv"].shape[0]
    max_seq_len = params["pe"].shape[0]
    assert S1 <= max_seq_len, "sequence (plus cls token) exceeds max_seq_len"
    head_dim = E // num_heads
    S1P = _round_up(S1, 8)                     # sublane-aligned per-batch block

    # [cls ; tokens] + fixed positional encoding assembled in plain JAX, then
    # padded to S1P rows so every in-kernel block is (8, .)-tile aligned.
    cls_tok = jnp.broadcast_to(params["cls"].reshape(1, 1, E), (B, 1, E))
    x = jnp.concatenate([cls_tok, tokens], axis=1) + params["pe"][None, :S1, :]
    x = jnp.pad(x, ((0, 0), (0, S1P - S1), (0, 0)))
    x = x.reshape(B * S1P, E).astype(jnp.float32)

    # Lane-dense classifier: pad (E, C) -> (E, CPAD); slice logits back below.
    C = num_classes
    CPAD = _round_up(max(C, 128), 128)
    wc = jnp.pad(params["classifier_w"], ((0, 0), (0, CPAD - C))).astype(compute_dtype)
    bc = jnp.pad(params["classifier_b"], ((0, 0), (0, CPAD - C)))

    # Matmul weights in bf16 for the MXU; biases / LN params stay f32.
    wqkv = params["wqkv"].astype(compute_dtype)
    wo = params["wo"].astype(compute_dtype)
    w1 = params["w1"].astype(compute_dtype)
    w2 = params["w2"].astype(compute_dtype)
    F = w1.shape[-1]

    # One batch block here (B is tiny); the leading "parallel" grid axis shards
    # batch blocks across TensorCores on v7x when B grows.
    batch_tile = B
    nb = B // batch_tile
    BMt = batch_tile * S1P

    kernel = functools.partial(
        transformer_layer_kernel,
        num_heads=num_heads, head_dim=head_dim,
        seq_valid=S1, seq_pad=S1P, batch_tile=batch_tile,
        compute_dtype=compute_dtype,
    )

    def wspec(shape):
        # per-layer weight slab: double-buffered DMA across the layer grid axis
        return pl.BlockSpec((1,) + shape, lambda b, l: (l, 0, 0))

    grid_spec = pltpu.PrefetchScalarGridSpec(
        num_scalar_prefetch=0,
        grid=(nb, L),
        in_specs=[
            pl.BlockSpec((BMt, E), lambda b, l: (b, 0)),          # x
            wspec((E, 3 * E)), wspec((1, 3 * E)),                 # wqkv, bqkv
            wspec((E, E)), wspec((1, E)),                         # wo, bo
            wspec((1, E)), wspec((1, E)),                         # ln1 g/b
            wspec((E, F)), wspec((1, F)),                         # w1, b1
            wspec((F, E)), wspec((1, E)),                         # w2, b2
            wspec((1, E)), wspec((1, E)),                         # ln2 g/b
            pl.BlockSpec((E, CPAD), lambda b, l: (0, 0)),         # wc
            pl.BlockSpec((1, CPAD), lambda b, l: (0, 0)),         # bc
        ],
        out_specs=pl.BlockSpec((batch_tile, CPAD), lambda b, l: (b, 0)),
        scratch_shapes=[pltpu.VMEM((BMt, E), jnp.float32)],       # persistent xf
    )

    logits_padded = pl.pallas_call(
        kernel,
        out_shape=jax.ShapeDtypeStruct((B, CPAD), jnp.float32),
        grid_spec=grid_spec,
        compiler_params=pltpu.CompilerParams(
            dimension_semantics=("parallel", "arbitrary")),
    )(
        x,
        wqkv, params["bqkv"], wo, params["bo"],
        params["ln1_g"], params["ln1_b"],
        w1, params["b1"], w2, params["b2"],
        params["ln2_g"], params["ln2_b"],
        wc, bc,
    )
    return logits_padded[:, :C]


# ----------------------------------------------------------------------------
# Parameter init (deterministic, synthetic)
# ----------------------------------------------------------------------------
def fixed_positional_encoding(max_seq_len, embed_dim):
    position = jnp.arange(0.0, max_seq_len)[:, None]                     # (L, 1)
    div_term = jnp.exp(
        jnp.arange(0, embed_dim, 2, dtype=jnp.float32)
        * (-(math.log(10000.0) / embed_dim))
    )                                                                    # (E/2,)
    ang = position * div_term                                            # (L, E/2)
    # interleave: even cols sin, odd cols cos (matches pe[:,0::2] / pe[:,1::2])
    return jnp.stack([jnp.sin(ang), jnp.cos(ang)], axis=-1).reshape(
        max_seq_len, embed_dim
    )


def init_params(key, *, embed_dim, num_heads, num_layers, max_seq_len,
                num_tokens, num_classes, fc_dim=None):
    E = embed_dim
    F = 4 * E if fc_dim is None else fc_dim
    keys = jax.random.split(key, 2 + num_layers)

    def dense(k, fan_in, fan_out):
        # weights stored (in, out); y = x @ W + b  (== PyTorch x @ W.T + b)
        return jax.random.normal(k, (fan_in, fan_out), jnp.float32) * (
            1.0 / math.sqrt(fan_in)
        )

    wqkv, bqkv, wo, bo = [], [], [], []
    ln1g, ln1b, w1, b1, w2, b2, ln2g, ln2b = [], [], [], [], [], [], [], []
    for i in range(num_layers):
        lk = jax.random.split(keys[2 + i], 6)
        wq, wk, wv = dense(lk[0], E, E), dense(lk[1], E, E), dense(lk[2], E, E)
        wqkv.append(jnp.concatenate([wq, wk, wv], axis=1))        # (E, 3E)
        bqkv.append(jnp.zeros((1, 3 * E), jnp.float32))
        wo.append(dense(lk[3], E, E)); bo.append(jnp.zeros((1, E), jnp.float32))
        ln1g.append(jnp.ones((1, E), jnp.float32))
        ln1b.append(jnp.zeros((1, E), jnp.float32))
        w1.append(dense(lk[4], E, F)); b1.append(jnp.zeros((1, F), jnp.float32))
        w2.append(dense(lk[5], F, E)); b2.append(jnp.zeros((1, E), jnp.float32))
        ln2g.append(jnp.ones((1, E), jnp.float32))
        ln2b.append(jnp.zeros((1, E), jnp.float32))

    return {
        "token_embedding": jax.random.normal(keys[0], (num_tokens, E), jnp.float32),
        "cls": jnp.zeros((1, E), jnp.float32),       # nn.Parameter(torch.zeros(1,1,E))
        "pe": fixed_positional_encoding(max_seq_len, E),   # precomputed once
        "classifier_w": dense(keys[1], E, num_classes),
        "classifier_b": jnp.zeros((1, num_classes), jnp.float32),
        "wqkv": jnp.stack(wqkv), "bqkv": jnp.stack(bqkv),
        "wo": jnp.stack(wo), "bo": jnp.stack(bo),
        "ln1_g": jnp.stack(ln1g), "ln1_b": jnp.stack(ln1b),
        "w1": jnp.stack(w1), "b1": jnp.stack(b1),
        "w2": jnp.stack(w2), "b2": jnp.stack(b2),
        "ln2_g": jnp.stack(ln2g), "ln2_b": jnp.stack(ln2b),
    }


# ----------------------------------------------------------------------------
if __name__ == "__main__":
    EMBED_DIM = 32
    NUM_HEADS = 4
    NUM_LAYERS = 2
    MAX_SEQ_LEN = 64
    NUM_TOKENS = 1000
    NUM_CLASSES = 2
    BATCH = 2
    SEQ = 8

    key = jax.random.PRNGKey(0)
    pkey, dkey = jax.random.split(key)

    params = init_params(
        pkey,
        embed_dim=EMBED_DIM,
        num_heads=NUM_HEADS,
        num_layers=NUM_LAYERS,
        max_seq_len=MAX_SEQ_LEN,
        num_tokens=NUM_TOKENS,
        num_classes=NUM_CLASSES,
    )

    token_ids = jax.random.randint(dkey, (BATCH, SEQ), 0, NUM_TOKENS, jnp.int32)

    logits = transformer_classifier_forward(
        token_ids, params, num_heads=NUM_HEADS, num_classes=NUM_CLASSES,
    )
    logits = jax.block_until_ready(logits)
    assert logits.shape == (BATCH, NUM_CLASSES)
    assert bool(jnp.all(jnp.isfinite(logits)))
    print("KERNEL_OK")
</pallas_src>

<mosaic_0001>
module attributes {stable_mosaic.version = 11 : i64} {
  func.func @transformer_layer_kernel(%arg0: i32, %arg1: i32, %arg2: memref<32x32xf32, #tpu.memory_space<vmem>>, %arg3: memref<1x32x96xbf16, #tpu.memory_space<vmem>>, %arg4: memref<1x1x96xf32, #tpu.memory_space<vmem>>, %arg5: memref<1x32x32xbf16, #tpu.memory_space<vmem>>, %arg6: memref<1x1x32xf32, #tpu.memory_space<vmem>>, %arg7: memref<1x1x32xf32, #tpu.memory_space<vmem>>, %arg8: memref<1x1x32xf32, #tpu.memory_space<vmem>>, %arg9: memref<1x32x128xbf16, #tpu.memory_space<vmem>>, %arg10: memref<1x1x128xf32, #tpu.memory_space<vmem>>, %arg11: memref<1x128x32xbf16, #tpu.memory_space<vmem>>, %arg12: memref<1x1x32xf32, #tpu.memory_space<vmem>>, %arg13: memref<1x1x32xf32, #tpu.memory_space<vmem>>, %arg14: memref<1x1x32xf32, #tpu.memory_space<vmem>>, %arg15: memref<32x128xbf16, #tpu.memory_space<vmem>>, %arg16: memref<1x128xf32, #tpu.memory_space<vmem>>, %arg17: memref<2x128xf32, #tpu.memory_space<vmem>>, %arg18: memref<32x32xf32, #tpu.memory_space<vmem>>) attributes {dimension_semantics = [#tpu.dimension_semantics<parallel>, #tpu.dimension_semantics<arbitrary>], iteration_bounds = array<i64: 1, 2>, scalar_prefetch = 0 : i64, scratch_operands = 1 : i64, tpu.core_type = #tpu.core_type<tc>, window_params = [{transform_indices = @transform_0, window_bounds = array<i64: 32, 32>}, {transform_indices = @transform_1, window_bounds = array<i64: 1, 32, 96>}, {transform_indices = @transform_2, window_bounds = array<i64: 1, 1, 96>}, {transform_indices = @transform_3, window_bounds = array<i64: 1, 32, 32>}, {transform_indices = @transform_4, window_bounds = array<i64: 1, 1, 32>}, {transform_indices = @transform_5, window_bounds = array<i64: 1, 1, 32>}, {transform_indices = @transform_6, window_bounds = array<i64: 1, 1, 32>}, {transform_indices = @transform_7, window_bounds = array<i64: 1, 32, 128>}, {transform_indices = @transform_8, window_bounds = array<i64: 1, 1, 128>}, {transform_indices = @transform_9, window_bounds = array<i64: 1, 128, 32>}, {transform_indices = @transform_10, window_bounds = array<i64: 1, 1, 32>}, {transform_indices = @transform_11, window_bounds = array<i64: 1, 1, 32>}, {transform_indices = @transform_12, window_bounds = array<i64: 1, 1, 32>}, {pipeline_mode = #tpu.pipeline_mode<synchronous>, transform_indices = @transform_13, window_bounds = array<i64: 32, 128>}, {pipeline_mode = #tpu.pipeline_mode<synchronous>, transform_indices = @transform_14, window_bounds = array<i64: 1, 128>}, {transform_indices = @transform_15, window_bounds = array<i64: 2, 128>}]} {
    %c0_i32 = arith.constant 0 : i32
    %0 = arith.cmpi eq, %arg1, %c0_i32 : i32
    %1 = arith.extui %0 : i1 to i32
    %c0_i32_0 = arith.constant 0 : i32
    %2 = arith.cmpi ne, %1, %c0_i32_0 : i32
    scf.if %2 {
      %c0_79 = arith.constant 0 : index
      %c0_80 = arith.constant 0 : index
      %216 = vector.load %arg2[%c0_79, %c0_80] : memref<32x32xf32, #tpu.memory_space<vmem>>, vector<32x32xf32>
      %c0_81 = arith.constant 0 : index
      %c0_82 = arith.constant 0 : index
      %217 = vector.load %arg18[%c0_81, %c0_82] : memref<32x32xf32, #tpu.memory_space<vmem>>, vector<32x32xf32>
      tpu.vector_store %arg18[%c0_81, %c0_82], %216 {strides = array<i32>} : memref<32x32xf32, #tpu.memory_space<vmem>>, vector<32x32xf32>,
    } else {
    }
    %c0 = arith.constant 0 : index
    %c0_1 = arith.constant 0 : index
    %3 = vector.load %arg18[%c0, %c0_1] : memref<32x32xf32, #tpu.memory_space<vmem>>, vector<32x32xf32>
    %c0_2 = arith.constant 0 : index
    %c0_3 = arith.constant 0 : index
    %c0_4 = arith.constant 0 : index
    %4 = vector.load %arg3[%c0_2, %c0_3, %c0_4] : memref<1x32x96xbf16, #tpu.memory_space<vmem>>, vector<1x32x96xbf16>
    %5 = vector.shape_cast %4 : vector<1x32x96xbf16> to vector<32x96xbf16>
    %6 = arith.truncf %3 : vector<32x32xf32> to vector<32x32xbf16>
    %cst = arith.constant dense<0.000000e+00> : vector<32x96xf32>
    %7 = tpu.matmul %6, %5, %cst {dimension_numbers = #tpu.dot_dimension_numbers<[1], [0], [0], [1], [0, 0, 1, 1], [], []>} : vector<32x32xbf16>, vector<32x96xbf16>, vector<32x96xf32> -> vector<32x96xf32>
    %c0_5 = arith.constant 0 : index
    %c0_6 = arith.constant 0 : index
    %c0_7 = arith.constant 0 : index
    %8 = vector.load %arg4[%c0_5, %c0_6, %c0_7] : memref<1x1x96xf32, #tpu.memory_space<vmem>>, vector<1x1x96xf32>
    %9 = vector.shape_cast %8 : vector<1x1x96xf32> to vector<1x96xf32>
    %10 = vector.broadcast %9 : vector<1x96xf32> to vector<32x96xf32>
    %11 = arith.addf %7, %10 : vector<32x96xf32>
    %12 = tpu.iota {dimensions = array<i32: 2>} : vector<1x1x16xi32>
    %c9_i32 = arith.constant 9 : i32
    %13 = vector.broadcast %c9_i32 : i32 to vector<1x1x16xi32>
    %14 = arith.cmpi slt, %12, %13 : vector<1x1x16xi32>
    %15 = vector.extract_strided_slice %11 {offsets = [0, 0], sizes = [32, 8], strides = [1, 1]} : vector<32x96xf32> to vector<32x8xf32>
    %16 = vector.shape_cast %15 : vector<32x8xf32> to vector<2x16x8xf32>
    %17 = vector.extract_strided_slice %11 {offsets = [0, 32], sizes = [32, 8], strides = [1, 1]} : vector<32x96xf32> to vector<32x8xf32>
    %18 = vector.shape_cast %17 : vector<32x8xf32> to vector<2x16x8xf32>
    %19 = vector.extract_strided_slice %11 {offsets = [0, 64], sizes = [32, 8], strides = [1, 1]} : vector<32x96xf32> to vector<32x8xf32>
    %20 = vector.shape_cast %19 : vector<32x8xf32> to vector<2x16x8xf32>
    %21 = arith.truncf %16 : vector<2x16x8xf32> to vector<2x16x8xbf16>
    %22 = arith.truncf %18 : vector<2x16x8xf32> to vector<2x16x8xbf16>
    "tpu.trace_start"() <{level = 10 : i32, message = "bqd,bkd->bqk"}> : () -> ()
    %cst_8 = arith.constant dense<0.000000e+00> : vector<2x16x16xf32>
    %23 = tpu.matmul %21, %22, %cst_8 {dimension_numbers = #tpu.dot_dimension_numbers<[2], [2], [1], [1], [0, 0, 0, 1, 1, 1], [0], [0]>} : vector<2x16x8xbf16>, vector<2x16x8xbf16>, vector<2x16x16xf32> -> vector<2x16x16xf32>
    "tpu.trace_stop"() : () -> ()
    %cst_9 = arith.constant 0.353553385 : f32
    %24 = vector.broadcast %cst_9 : f32 to vector<2x16x16xf32>
    %25 = arith.mulf %23, %24 : vector<2x16x16xf32>
    %cst_10 = arith.constant -1.000000e+30 : f32
    %26 = vector.shape_cast %14 : vector<1x1x16xi1> to vector<1x1x16xi1>
    %27 = vector.broadcast %26 : vector<1x1x16xi1> to vector<2x16x16xi1>
    %28 = vector.broadcast %cst_10 : f32 to vector<2x16x16xf32>
    %29 = arith.select %27, %25, %28 : vector<2x16x16xi1>, vector<2x16x16xf32>
    %cst_11 = arith.constant dense<0xFF800000> : vector<2x16xf32>
    %30 = vector.multi_reduction <maximumf>, %29, %cst_11 [2] : vector<2x16x16xf32> to vector<2x16xf32>
    %31 = vector.shape_cast %30 : vector<2x16xf32> to vector<2x16x1xf32>
    %32 = vector.broadcast %31 : vector<2x16x1xf32> to vector<2x16x16xf32>
    %33 = arith.subf %29, %32 : vector<2x16x16xf32>
    %34 = math.exp %33 : vector<2x16x16xf32>
    %cst_12 = arith.constant dense<0.000000e+00> : vector<2x16xf32>
    %35 = vector.multi_reduction <add>, %34, %cst_12 [2] : vector<2x16x16xf32> to vector<2x16xf32>
    %36 = vector.shape_cast %35 : vector<2x16xf32> to vector<2x16x1xf32>
    %37 = tpu.reciprocal %36 : vector<2x16x1xf32> -> vector<2x16x1xf32>
    %38 = vector.broadcast %37 : vector<2x16x1xf32> to vector<2x16x16xf32>
    %39 = arith.mulf %34, %38 : vector<2x16x16xf32>
    %40 = arith.truncf %39 : vector<2x16x16xf32> to vector<2x16x16xbf16>
    %41 = arith.truncf %20 : vector<2x16x8xf32> to vector<2x16x8xbf16>
    "tpu.trace_start"() <{level = 10 : i32, message = "bqk,bkd->bqd"}> : () -> ()
    %cst_13 = arith.constant dense<0.000000e+00> : vector<2x16x8xf32>
    %42 = tpu.matmul %40, %41, %cst_13 {dimension_numbers = #tpu.dot_dimension_numbers<[2], [1], [1], [2], [0, 0, 0, 1, 1, 2], [0], [0]>} : vector<2x16x16xbf16>, vector<2x16x8xbf16>, vector<2x16x8xf32> -> vector<2x16x8xf32>
    "tpu.trace_stop"() : () -> ()
    %43 = vector.shape_cast %42 : vector<2x16x8xf32> to vector<32x8xf32>
    %44 = vector.extract_strided_slice %11 {offsets = [0, 8], sizes = [32, 8], strides = [1, 1]} : vector<32x96xf32> to vector<32x8xf32>
    %45 = vector.shape_cast %44 : vector<32x8xf32> to vector<2x16x8xf32>
    %46 = vector.extract_strided_slice %11 {offsets = [0, 40], sizes = [32, 8], strides = [1, 1]} : vector<32x96xf32> to vector<32x8xf32>
    %47 = vector.shape_cast %46 : vector<32x8xf32> to vector<2x16x8xf32>
    %48 = vector.extract_strided_slice %11 {offsets = [0, 72], sizes = [32, 8], strides = [1, 1]} : vector<32x96xf32> to vector<32x8xf32>
    %49 = vector.shape_cast %48 : vector<32x8xf32> to vector<2x16x8xf32>
    %50 = arith.truncf %45 : vector<2x16x8xf32> to vector<2x16x8xbf16>
    %51 = arith.truncf %47 : vector<2x16x8xf32> to vector<2x16x8xbf16>
    "tpu.trace_start"() <{level = 10 : i32, message = "bqd,bkd->bqk"}> : () -> ()
    %cst_14 = arith.constant dense<0.000000e+00> : vector<2x16x16xf32>
    %52 = tpu.matmul %50, %51, %cst_14 {dimension_numbers = #tpu.dot_dimension_numbers<[2], [2], [1], [1], [0, 0, 0, 1, 1, 1], [0], [0]>} : vector<2x16x8xbf16>, vector<2x16x8xbf16>, vector<2x16x16xf32> -> vector<2x16x16xf32>
    "tpu.trace_stop"() : () -> ()
    %cst_15 = arith.constant 0.353553385 : f32
    %53 = vector.broadcast %cst_15 : f32 to vector<2x16x16xf32>
    %54 = arith.mulf %52, %53 : vector<2x16x16xf32>
    %cst_16 = arith.constant -1.000000e+30 : f32
    %55 = vector.shape_cast %14 : vector<1x1x16xi1> to vector<1x1x16xi1>
    %56 = vector.broadcast %55 : vector<1x1x16xi1> to vector<2x16x16xi1>
    %57 = vector.broadcast %cst_16 : f32 to vector<2x16x16xf32>
    %58 = arith.select %56, %54, %57 : vector<2x16x16xi1>, vector<2x16x16xf32>
    %cst_17 = arith.constant dense<0xFF800000> : vector<2x16xf32>
    %59 = vector.multi_reduction <maximumf>, %58, %cst_17 [2] : vector<2x16x16xf32> to vector<2x16xf32>
    %60 = vector.shape_cast %59 : vector<2x16xf32> to vector<2x16x1xf32>
    %61 = vector.broadcast %60 : vector<2x16x1xf32> to vector<2x16x16xf32>
    %62 = arith.subf %58, %61 : vector<2x16x16xf32>
    %63 = math.exp %62 : vector<2x16x16xf32>
    %cst_18 = arith.constant dense<0.000000e+00> : vector<2x16xf32>
    %64 = vector.multi_reduction <add>, %63, %cst_18 [2] : vector<2x16x16xf32> to vector<2x16xf32>
    %65 = vector.shape_cast %64 : vector<2x16xf32> to vector<2x16x1xf32>
    %66 = tpu.reciprocal %65 : vector<2x16x1xf32> -> vector<2x16x1xf32>
    %67 = vector.broadcast %66 : vector<2x16x1xf32> to vector<2x16x16xf32>
    %68 = arith.mulf %63, %67 : vector<2x16x16xf32>
    %69 = arith.truncf %68 : vector<2x16x16xf32> to vector<2x16x16xbf16>
    %70 = arith.truncf %49 : vector<2x16x8xf32> to vector<2x16x8xbf16>
    "tpu.trace_start"() <{level = 10 : i32, message = "bqk,bkd->bqd"}> : () -> ()
    %cst_19 = arith.constant dense<0.000000e+00> : vector<2x16x8xf32>
    %71 = tpu.matmul %69, %70, %cst_19 {dimension_numbers = #tpu.dot_dimension_numbers<[2], [1], [1], [2], [0, 0, 0, 1, 1, 2], [0], [0]>} : vector<2x16x16xbf16>, vector<2x16x8xbf16>, vector<2x16x8xf32> -> vector<2x16x8xf32>
    "tpu.trace_stop"() : () -> ()
    %72 = vector.shape_cast %71 : vector<2x16x8xf32> to vector<32x8xf32>
    %73 = vector.extract_strided_slice %11 {offsets = [0, 16], sizes = [32, 8], strides = [1, 1]} : vector<32x96xf32> to vector<32x8xf32>
    %74 = vector.shape_cast %73 : vector<32x8xf32> to vector<2x16x8xf32>
    %75 = vector.extract_strided_slice %11 {offsets = [0, 48], sizes = [32, 8], strides = [1, 1]} : vector<32x96xf32> to vector<32x8xf32>
    %76 = vector.shape_cast %75 : vector<32x8xf32> to vector<2x16x8xf32>
    %77 = vector.extract_strided_slice %11 {offsets = [0, 80], sizes = [32, 8], strides = [1, 1]} : vector<32x96xf32> to vector<32x8xf32>
    %78 = vector.shape_cast %77 : vector<32x8xf32> to vector<2x16x8xf32>
    %79 = arith.truncf %74 : vector<2x16x8xf32> to vector<2x16x8xbf16>
    %80 = arith.truncf %76 : vector<2x16x8xf32> to vector<2x16x8xbf16>
    "tpu.trace_start"() <{level = 10 : i32, message = "bqd,bkd->bqk"}> : () -> ()
    %cst_20 = arith.constant dense<0.000000e+00> : vector<2x16x16xf32>
    %81 = tpu.matmul %79, %80, %cst_20 {dimension_numbers = #tpu.dot_dimension_numbers<[2], [2], [1], [1], [0, 0, 0, 1, 1, 1], [0], [0]>} : vector<2x16x8xbf16>, vector<2x16x8xbf16>, vector<2x16x16xf32> -> vector<2x16x16xf32>
    "tpu.trace_stop"() : () -> ()
    %cst_21 = arith.constant 0.353553385 : f32
    %82 = vector.broadcast %cst_21 : f32 to vector<2x16x16xf32>
    %83 = arith.mulf %81, %82 : vector<2x16x16xf32>
    %cst_22 = arith.constant -1.000000e+30 : f32
    %84 = vector.shape_cast %14 : vector<1x1x16xi1> to vector<1x1x16xi1>
    %85 = vector.broadcast %84 : vector<1x1x16xi1> to vector<2x16x16xi1>
    %86 = vector.broadcast %cst_22 : f32 to vector<2x16x16xf32>
    %87 = arith.select %85, %83, %86 : vector<2x16x16xi1>, vector<2x16x16xf32>
    %cst_23 = arith.constant dense<0xFF800000> : vector<2x16xf32>
    %88 = vector.multi_reduction <maximumf>, %87, %cst_23 [2] : vector<2x16x16xf32> to vector<2x16xf32>
    %89 = vector.shape_cast %88 : vector<2x16xf32> to vector<2x16x1xf32>
    %90 = vector.broadcast %89 : vector<2x16x1xf32> to vector<2x16x16xf32>
    %91 = arith.subf %87, %90 : vector<2x16x16xf32>
    %92 = math.exp %91 : vector<2x16x16xf32>
    %cst_24 = arith.constant dense<0.000000e+00> : vector<2x16xf32>
    %93 = vector.multi_reduction <add>, %92, %cst_24 [2] : vector<2x16x16xf32> to vector<2x16xf32>
    %94 = vector.shape_cast %93 : vector<2x16xf32> to vector<2x16x1xf32>
    %95 = tpu.reciprocal %94 : vector<2x16x1xf32> -> vector<2x16x1xf32>
    %96 = vector.broadcast %95 : vector<2x16x1xf32> to vector<2x16x16xf32>
    %97 = arith.mulf %92, %96 : vector<2x16x16xf32>
    %98 = arith.truncf %97 : vector<2x16x16xf32> to vector<2x16x16xbf16>
    %99 = arith.truncf %78 : vector<2x16x8xf32> to vector<2x16x8xbf16>
    "tpu.trace_start"() <{level = 10 : i32, message = "bqk,bkd->bqd"}> : () -> ()
    %cst_25 = arith.constant dense<0.000000e+00> : vector<2x16x8xf32>
    %100 = tpu.matmul %98, %99, %cst_25 {dimension_numbers = #tpu.dot_dimension_numbers<[2], [1], [1], [2], [0, 0, 0, 1, 1, 2], [0], [0]>} : vector<2x16x16xbf16>, vector<2x16x8xbf16>, vector<2x16x8xf32> -> vector<2x16x8xf32>
    "tpu.trace_stop"() : () -> ()
    %101 = vector.shape_cast %100 : vector<2x16x8xf32> to vector<32x8xf32>
    %102 = vector.extract_strided_slice %11 {offsets = [0, 24], sizes = [32, 8], strides = [1, 1]} : vector<32x96xf32> to vector<32x8xf32>
    %103 = vector.shape_cast %102 : vector<32x8xf32> to vector<2x16x8xf32>
    %104 = vector.extract_strided_slice %11 {offsets = [0, 56], sizes = [32, 8], strides = [1, 1]} : vector<32x96xf32> to vector<32x8xf32>
    %105 = vector.shape_cast %104 : vector<32x8xf32> to vector<2x16x8xf32>
    %106 = vector.extract_strided_slice %11 {offsets = [0, 88], sizes = [32, 8], strides = [1, 1]} : vector<32x96xf32> to vector<32x8xf32>
    %107 = vector.shape_cast %106 : vector<32x8xf32> to vector<2x16x8xf32>
    %108 = arith.truncf %103 : vector<2x16x8xf32> to vector<2x16x8xbf16>
    %109 = arith.truncf %105 : vector<2x16x8xf32> to vector<2x16x8xbf16>
    "tpu.trace_start"() <{level = 10 : i32, message = "bqd,bkd->bqk"}> : () -> ()
    %cst_26 = arith.constant dense<0.000000e+00> : vector<2x16x16xf32>
    %110 = tpu.matmul %108, %109, %cst_26 {dimension_numbers = #tpu.dot_dimension_numbers<[2], [2], [1], [1], [0, 0, 0, 1, 1, 1], [0], [0]>} : vector<2x16x8xbf16>, vector<2x16x8xbf16>, vector<2x16x16xf32> -> vector<2x16x16xf32>
    "tpu.trace_stop"() : () -> ()
    %cst_27 = arith.constant 0.353553385 : f32
    %111 = vector.broadcast %cst_27 : f32 to vector<2x16x16xf32>
    %112 = arith.mulf %110, %111 : vector<2x16x16xf32>
    %cst_28 = arith.constant -1.000000e+30 : f32
    %113 = vector.shape_cast %14 : vector<1x1x16xi1> to vector<1x1x16xi1>
    %114 = vector.broadcast %113 : vector<1x1x16xi1> to vector<2x16x16xi1>
    %115 = vector.broadcast %cst_28 : f32 to vector<2x16x16xf32>
    %116 = arith.select %114, %112, %115 : vector<2x16x16xi1>, vector<2x16x16xf32>
    %cst_29 = arith.constant dense<0xFF800000> : vector<2x16xf32>
    %117 = vector.multi_reduction <maximumf>, %116, %cst_29 [2] : vector<2x16x16xf32> to vector<2x16xf32>
    %118 = vector.shape_cast %117 : vector<2x16xf32> to vector<2x16x1xf32>
    %119 = vector.broadcast %118 : vector<2x16x1xf32> to vector<2x16x16xf32>
    %120 = arith.subf %116, %119 : vector<2x16x16xf32>
    %121 = math.exp %120 : vector<2x16x16xf32>
    %cst_30 = arith.constant dense<0.000000e+00> : vector<2x16xf32>
    %122 = vector.multi_reduction <add>, %121, %cst_30 [2] : vector<2x16x16xf32> to vector<2x16xf32>
    %123 = vector.shape_cast %122 : vector<2x16xf32> to vector<2x16x1xf32>
    %124 = tpu.reciprocal %123 : vector<2x16x1xf32> -> vector<2x16x1xf32>
    %125 = vector.broadcast %124 : vector<2x16x1xf32> to vector<2x16x16xf32>
    %126 = arith.mulf %121, %125 : vector<2x16x16xf32>
    %127 = arith.truncf %126 : vector<2x16x16xf32> to vector<2x16x16xbf16>
    %128 = arith.truncf %107 : vector<2x16x8xf32> to vector<2x16x8xbf16>
    "tpu.trace_start"() <{level = 10 : i32, message = "bqk,bkd->bqd"}> : () -> ()
    %cst_31 = arith.constant dense<0.000000e+00> : vector<2x16x8xf32>
    %129 = tpu.matmul %127, %128, %cst_31 {dimension_numbers = #tpu.dot_dimension_numbers<[2], [1], [1], [2], [0, 0, 0, 1, 1, 2], [0], [0]>} : vector<2x16x16xbf16>, vector<2x16x8xbf16>, vector<2x16x8xf32> -> vector<2x16x8xf32>
    "tpu.trace_stop"() : () -> ()
    %130 = vector.shape_cast %129 : vector<2x16x8xf32> to vector<32x8xf32>
    %131 = tpu.concatenate %43, %72, %101, %130 in 1 : vector<32x8xf32>, vector<32x8xf32>, vector<32x8xf32>, vector<32x8xf32> -> vector<32x32xf32>
    %c0_32 = arith.constant 0 : index
    %c0_33 = arith.constant 0 : index
    %c0_34 = arith.constant 0 : index
    %132 = vector.load %arg5[%c0_32, %c0_33, %c0_34] : memref<1x32x32xbf16, #tpu.memory_space<vmem>>, vector<1x32x32xbf16>
    %133 = vector.shape_cast %132 : vector<1x32x32xbf16> to vector<32x32xbf16>
    %134 = arith.truncf %131 : vector<32x32xf32> to vector<32x32xbf16>
    %cst_35 = arith.constant dense<0.000000e+00> : vector<32x32xf32>
    %135 = tpu.matmul %134, %133, %cst_35 {dimension_numbers = #tpu.dot_dimension_numbers<[1], [0], [0], [1], [0, 0, 1, 1], [], []>} : vector<32x32xbf16>, vector<32x32xbf16>, vector<32x32xf32> -> vector<32x32xf32>
    %c0_36 = arith.constant 0 : index
    %c0_37 = arith.constant 0 : index
    %c0_38 = arith.constant 0 : index
    %136 = vector.load %arg6[%c0_36, %c0_37, %c0_38] : memref<1x1x32xf32, #tpu.memory_space<vmem>>, vector<1x1x32xf32>
    %137 = vector.shape_cast %136 : vector<1x1x32xf32> to vector<1x32xf32>
    %138 = vector.broadcast %137 : vector<1x32xf32> to vector<32x32xf32>
    %139 = arith.addf %135, %138 : vector<32x32xf32>
    %140 = arith.addf %139, %3 : vector<32x32xf32>
    %c0_39 = arith.constant 0 : index
    %c0_40 = arith.constant 0 : index
    %c0_41 = arith.constant 0 : index
    %141 = vector.load %arg7[%c0_39, %c0_40, %c0_41] : memref<1x1x32xf32, #tpu.memory_space<vmem>>, vector<1x1x32xf32>
    %142 = vector.shape_cast %141 : vector<1x1x32xf32> to vector<1x32xf32>
    %c0_42 = arith.constant 0 : index
    %c0_43 = arith.constant 0 : index
    %c0_44 = arith.constant 0 : index
    %143 = vector.load %arg8[%c0_42, %c0_43, %c0_44] : memref<1x1x32xf32, #tpu.memory_space<vmem>>, vector<1x1x32xf32>
    %144 = vector.shape_cast %143 : vector<1x1x32xf32> to vector<1x32xf32>
    %cst_45 = arith.constant dense<0.000000e+00> : vector<32xf32>
    %145 = vector.multi_reduction <add>, %140, %cst_45 [1] : vector<32x32xf32> to vector<32xf32>
    %146 = vector.shape_cast %145 : vector<32xf32> to vector<32x1xf32>
    %cst_46 = arith.constant 3.200000e+01 : f32
    %147 = vector.broadcast %cst_46 : f32 to vector<32x1xf32>
    %148 = arith.divf %146, %147 : vector<32x1xf32>
    %149 = vector.broadcast %148 : vector<32x1xf32> to vector<32x32xf32>
    %150 = arith.subf %140, %149 : vector<32x32xf32>
    %151 = arith.mulf %150, %150 : vector<32x32xf32>
    %cst_47 = arith.constant dense<0.000000e+00> : vector<32xf32>
    %152 = vector.multi_reduction <add>, %151, %cst_47 [1] : vector<32x32xf32> to vector<32xf32>
    %153 = vector.shape_cast %152 : vector<32xf32> to vector<32x1xf32>
    %cst_48 = arith.constant 3.200000e+01 : f32
    %154 = vector.broadcast %cst_48 : f32 to vector<32x1xf32>
    %155 = arith.divf %153, %154 : vector<32x1xf32>
    %156 = vector.broadcast %148 : vector<32x1xf32> to vector<32x32xf32>
    %157 = arith.subf %140, %156 : vector<32x32xf32>
    %cst_49 = arith.constant 9.99999974E-6 : f32
    %158 = vector.broadcast %cst_49 : f32 to vector<32x1xf32>
    %159 = arith.addf %155, %158 : vector<32x1xf32>
    %160 = math.rsqrt %159 : vector<32x1xf32>
    %161 = vector.broadcast %160 : vector<32x1xf32> to vector<32x32xf32>
    %162 = arith.mulf %157, %161 : vector<32x32xf32>
    %163 = vector.broadcast %142 : vector<1x32xf32> to vector<32x32xf32>
    %164 = arith.mulf %162, %163 : vector<32x32xf32>
    %165 = vector.broadcast %144 : vector<1x32xf32> to vector<32x32xf32>
    %166 = arith.addf %164, %165 : vector<32x32xf32>
    %c0_50 = arith.constant 0 : index
    %c0_51 = arith.constant 0 : index
    %c0_52 = arith.constant 0 : index
    %167 = vector.load %arg9[%c0_50, %c0_51, %c0_52] : memref<1x32x128xbf16, #tpu.memory_space<vmem>>, vector<1x32x128xbf16>
    %168 = vector.shape_cast %167 : vector<1x32x128xbf16> to vector<32x128xbf16>
    %169 = arith.truncf %166 : vector<32x32xf32> to vector<32x32xbf16>
    %cst_53 = arith.constant dense<0.000000e+00> : vector<32x128xf32>
    %170 = tpu.matmul %169, %168, %cst_53 {dimension_numbers = #tpu.dot_dimension_numbers<[1], [0], [0], [1], [0, 0, 1, 1], [], []>} : vector<32x32xbf16>, vector<32x128xbf16>, vector<32x128xf32> -> vector<32x128xf32>
    %c0_54 = arith.constant 0 : index
    %c0_55 = arith.constant 0 : index
    %c0_56 = arith.constant 0 : index
    %171 = vector.load %arg10[%c0_54, %c0_55, %c0_56] : memref<1x1x128xf32, #tpu.memory_space<vmem>>, vector<1x1x128xf32>
    %172 = vector.shape_cast %171 : vector<1x1x128xf32> to vector<1x128xf32>
    %173 = vector.broadcast %172 : vector<1x128xf32> to vector<32x128xf32>
    %174 = arith.addf %170, %173 : vector<32x128xf32>
    %cst_57 = arith.constant 0.000000e+00 : f32
    %175 = vector.broadcast %cst_57 : f32 to vector<32x128xf32>
    %176 = arith.maximumf %174, %175 : vector<32x128xf32>
    %c0_58 = arith.constant 0 : index
    %c0_59 = arith.constant 0 : index
    %c0_60 = arith.constant 0 : index
    %177 = vector.load %arg11[%c0_58, %c0_59, %c0_60] : memref<1x128x32xbf16, #tpu.memory_space<vmem>>, vector<1x128x32xbf16>
    %178 = vector.shape_cast %177 : vector<1x128x32xbf16> to vector<128x32xbf16>
    %179 = arith.truncf %176 : vector<32x128xf32> to vector<32x128xbf16>
    %cst_61 = arith.constant dense<0.000000e+00> : vector<32x32xf32>
    %180 = tpu.matmul %179, %178, %cst_61 {dimension_numbers = #tpu.dot_dimension_numbers<[1], [0], [0], [1], [0, 0, 1, 1], [], []>} : vector<32x128xbf16>, vector<128x32xbf16>, vector<32x32xf32> -> vector<32x32xf32>
    %c0_62 = arith.constant 0 : index
    %c0_63 = arith.constant 0 : index
    %c0_64 = arith.constant 0 : index
    %181 = vector.load %arg12[%c0_62, %c0_63, %c0_64] : memref<1x1x32xf32, #tpu.memory_space<vmem>>, vector<1x1x32xf32>
    %182 = vector.shape_cast %181 : vector<1x1x32xf32> to vector<1x32xf32>
    %183 = vector.broadcast %182 : vector<1x32xf32> to vector<32x32xf32>
    %184 = arith.addf %180, %183 : vector<32x32xf32>
    %185 = arith.addf %184, %166 : vector<32x32xf32>
    %c0_65 = arith.constant 0 : index
    %c0_66 = arith.constant 0 : index
    %c0_67 = arith.constant 0 : index
    %186 = vector.load %arg13[%c0_65, %c0_66, %c0_67] : memref<1x1x32xf32, #tpu.memory_space<vmem>>, vector<1x1x32xf32>
    %187 = vector.shape_cast %186 : vector<1x1x32xf32> to vector<1x32xf32>
    %c0_68 = arith.constant 0 : index
    %c0_69 = arith.constant 0 : index
    %c0_70 = arith.constant 0 : index
    %188 = vector.load %arg14[%c0_68, %c0_69, %c0_70] : memref<1x1x32xf32, #tpu.memory_space<vmem>>, vector<1x1x32xf32>
    %189 = vector.shape_cast %188 : vector<1x1x32xf32> to vector<1x32xf32>
    %cst_71 = arith.constant dense<0.000000e+00> : vector<32xf32>
    %190 = vector.multi_reduction <add>, %185, %cst_71 [1] : vector<32x32xf32> to vector<32xf32>
    %191 = vector.shape_cast %190 : vector<32xf32> to vector<32x1xf32>
    %cst_72 = arith.constant 3.200000e+01 : f32
    %192 = vector.broadcast %cst_72 : f32 to vector<32x1xf32>
    %193 = arith.divf %191, %192 : vector<32x1xf32>
    %194 = vector.broadcast %193 : vector<32x1xf32> to vector<32x32xf32>
    %195 = arith.subf %185, %194 : vector<32x32xf32>
    %196 = arith.mulf %195, %195 : vector<32x32xf32>
    %cst_73 = arith.constant dense<0.000000e+00> : vector<32xf32>
    %197 = vector.multi_reduction <add>, %196, %cst_73 [1] : vector<32x32xf32> to vector<32xf32>
    %198 = vector.shape_cast %197 : vector<32xf32> to vector<32x1xf32>
    %cst_74 = arith.constant 3.200000e+01 : f32
    %199 = vector.broadcast %cst_74 : f32 to vector<32x1xf32>
    %200 = arith.divf %198, %199 : vector<32x1xf32>
    %201 = vector.broadcast %193 : vector<32x1xf32> to vector<32x32xf32>
    %202 = arith.subf %185, %201 : vector<32x32xf32>
    %cst_75 = arith.constant 9.99999974E-6 : f32
    %203 = vector.broadcast %cst_75 : f32 to vector<32x1xf32>
    %204 = arith.addf %200, %203 : vector<32x1xf32>
    %205 = math.rsqrt %204 : vector<32x1xf32>
    %206 = vector.broadcast %205 : vector<32x1xf32> to vector<32x32xf32>
    %207 = arith.mulf %202, %206 : vector<32x32xf32>
    %208 = vector.broadcast %187 : vector<1x32xf32> to vector<32x32xf32>
    %209 = arith.mulf %207, %208 : vector<32x32xf32>
    %210 = vector.broadcast %189 : vector<1x32xf32> to vector<32x32xf32>
    %211 = arith.addf %209, %210 : vector<32x32xf32>
    %c0_76 = arith.constant 0 : index
    %c0_77 = arith.constant 0 : index
    %212 = vector.load %arg18[%c0_76, %c0_77] : memref<32x32xf32, #tpu.memory_space<vmem>>, vector<32x32xf32>
    tpu.vector_store %arg18[%c0_76, %c0_77], %211 {strides = array<i32>} : memref<32x32xf32, #tpu.memory_space<vmem>>, vector<32x32xf32>,
    %c1_i32 = arith.constant 1 : i32
    %213 = arith.cmpi eq, %arg1, %c1_i32 : i32
    %214 = arith.extui %213 : i1 to i32
    %c0_i32_78 = arith.constant 0 : i32
    %215 = arith.cmpi ne, %214, %c0_i32_78 : i32
    scf.if %215 {
      %216 = vector.shape_cast %211 : vector<32x32xf32> to vector<2x16x32xf32>
      %217 = vector.extract_strided_slice %216 {offsets = [0, 0, 0], sizes = [2, 1, 32], strides = [1, 1, 1]} : vector<2x16x32xf32> to vector<2x1x32xf32>
      %218 = vector.shape_cast %217 : vector<2x1x32xf32> to vector<2x32xf32>
      %c0_79 = arith.constant 0 : index
      %c0_80 = arith.constant 0 : index
      %219 = vector.load %arg15[%c0_79, %c0_80] : memref<32x128xbf16, #tpu.memory_space<vmem>>, vector<32x128xbf16>
      %220 = arith.truncf %218 : vector<2x32xf32> to vector<2x32xbf16>
      %cst_81 = arith.constant dense<0.000000e+00> : vector<2x128xf32>
      %221 = tpu.matmul %220, %219, %cst_81 {dimension_numbers = #tpu.dot_dimension_numbers<[1], [0], [0], [1], [0, 0, 1, 1], [], []>} : vector<2x32xbf16>, vector<32x128xbf16>, vector<2x128xf32> -> vector<2x128xf32>
      %c0_82 = arith.constant 0 : index
      %c0_83 = arith.constant 0 : index
      %222 = vector.load %arg16[%c0_82, %c0_83] : memref<1x128xf32, #tpu.memory_space<vmem>>, vector<1x128xf32>
      %223 = vector.broadcast %222 : vector<1x128xf32> to vector<2x128xf32>
      %224 = arith.addf %221, %223 : vector<2x128xf32>
      %c0_84 = arith.constant 0 : index
      %c0_85 = arith.constant 0 : index
      %225 = vector.load %arg17[%c0_84, %c0_85] : memref<2x128xf32, #tpu.memory_space<vmem>>, vector<2x128xf32>
      tpu.vector_store %arg17[%c0_84, %c0_85], %224 {strides = array<i32>} : memref<2x128xf32, #tpu.memory_space<vmem>>, vector<2x128xf32>,
    } else {
    }
    return
  }
  func.func @transform_0(%arg0: i32, %arg1: i32) -> (i32, i32) {
    %c0_i32 = arith.constant 0 : i32
    %c0_i32_0 = arith.constant 0 : i32
    return %arg0, %c0_i32 : i32, i32
  }
  func.func @transform_1(%arg0: i32, %arg1: i32) -> (i32, i32, i32) {
    %c0_i32 = arith.constant 0 : i32
    %c0_i32_0 = arith.constant 0 : i32
    %c0_i32_1 = arith.constant 0 : i32
    return %arg1, %c0_i32, %c0_i32_0 : i32, i32, i32
  }
  func.func @transform_2(%arg0: i32, %arg1: i32) -> (i32, i32, i32) {
    %c0_i32 = arith.constant 0 : i32
    %c0_i32_0 = arith.constant 0 : i32
    %c0_i32_1 = arith.constant 0 : i32
    return %arg1, %c0_i32, %c0_i32_0 : i32, i32, i32
  }
  func.func @transform_3(%arg0: i32, %arg1: i32) -> (i32, i32, i32) {
    %c0_i32 = arith.constant 0 : i32
    %c0_i32_0 = arith.constant 0 : i32
    %c0_i32_1 = arith.constant 0 : i32
    return %arg1, %c0_i32, %c0_i32_0 : i32, i32, i32
  }
  func.func @transform_4(%arg0: i32, %arg1: i32) -> (i32, i32, i32) {
    %c0_i32 = arith.constant 0 : i32
    %c0_i32_0 = arith.constant 0 : i32
    %c0_i32_1 = arith.constant 0 : i32
    return %arg1, %c0_i32, %c0_i32_0 : i32, i32, i32
  }
  func.func @transform_5(%arg0: i32, %arg1: i32) -> (i32, i32, i32) {
    %c0_i32 = arith.constant 0 : i32
    %c0_i32_0 = arith.constant 0 : i32
    %c0_i32_1 = arith.constant 0 : i32
    return %arg1, %c0_i32, %c0_i32_0 : i32, i32, i32
  }
  func.func @transform_6(%arg0: i32, %arg1: i32) -> (i32, i32, i32) {
    %c0_i32 = arith.constant 0 : i32
    %c0_i32_0 = arith.constant 0 : i32
    %c0_i32_1 = arith.constant 0 : i32
    return %arg1, %c0_i32, %c0_i32_0 : i32, i32, i32
  }
  func.func @transform_7(%arg0: i32, %arg1: i32) -> (i32, i32, i32) {
    %c0_i32 = arith.constant 0 : i32
    %c0_i32_0 = arith.constant 0 : i32
    %c0_i32_1 = arith.constant 0 : i32
    return %arg1, %c0_i32, %c0_i32_0 : i32, i32, i32
  }
  func.func @transform_8(%arg0: i32, %arg1: i32) -> (i32, i32, i32) {
    %c0_i32 = arith.constant 0 : i32
    %c0_i32_0 = arith.constant 0 : i32
    %c0_i32_1 = arith.constant 0 : i32
    return %arg1, %c0_i32, %c0_i32_0 : i32, i32, i32
  }
  func.func @transform_9(%arg0: i32, %arg1: i32) -> (i32, i32, i32) {
    %c0_i32 = arith.constant 0 : i32
    %c0_i32_0 = arith.constant 0 : i32
    %c0_i32_1 = arith.constant 0 : i32
    return %arg1, %c0_i32, %c0_i32_0 : i32, i32, i32
  }
  func.func @transform_10(%arg0: i32, %arg1: i32) -> (i32, i32, i32) {
    %c0_i32 = arith.constant 0 : i32
    %c0_i32_0 = arith.constant 0 : i32
    %c0_i32_1 = arith.constant 0 : i32
    return %arg1, %c0_i32, %c0_i32_0 : i32, i32, i32
  }
  func.func @transform_11(%arg0: i32, %arg1: i32) -> (i32, i32, i32) {
    %c0_i32 = arith.constant 0 : i32
    %c0_i32_0 = arith.constant 0 : i32
    %c0_i32_1 = arith.constant 0 : i32
    return %arg1, %c0_i32, %c0_i32_0 : i32, i32, i32
  }
  func.func @transform_12(%arg0: i32, %arg1: i32) -> (i32, i32, i32) {
    %c0_i32 = arith.constant 0 : i32
    %c0_i32_0 = arith.constant 0 : i32
    %c0_i32_1 = arith.constant 0 : i32
    return %arg1, %c0_i32, %c0_i32_0 : i32, i32, i32
  }
  func.func @transform_13(%arg0: i32, %arg1: i32) -> (i32, i32) {
    %c0_i32 = arith.constant 0 : i32
    %c0_i32_0 = arith.constant 0 : i32
    %c0_i32_1 = arith.constant 0 : i32
    return %c0_i32, %c0_i32_0 : i32, i32
  }
  func.func @transform_14(%arg0: i32, %arg1: i32) -> (i32, i32) {
    %c0_i32 = arith.constant 0 : i32
    %c0_i32_0 = arith.constant 0 : i32
    %c0_i32_1 = arith.constant 0 : i32
    return %c0_i32, %c0_i32_0 : i32, i32
  }
  func.func @transform_15(%arg0: i32, %arg1: i32) -> (i32, i32) {
    %c0_i32 = arith.constant 0 : i32
    %c0_i32_0 = arith.constant 0 : i32
    return %arg0, %c0_i32 : i32, i32
  }
}

</mosaic_0001>

<bundles_post_ra>
// kernel: tpu_custom_call.1
= control target key start
LH: loop header
LB: loop body
LE: loop exit
PB: predicated region body
PF: predicated region fallthrough
CT: control target
= control target key end

     0   :  { %s3605_s0 = inlined_call_operand.vmem [shape: f32[32,32], index: 0, kind: input, shape index: {}]   ;;  %s3606_s1 = inlined_call_operand.vmem [shape: bf16[2,32,96], index: 1, kind: input, shape index: {}]   ;;  %s3607_s2 = inlined_call_operand.vmem [shape: f32[2,1,96], index: 2, kind: input, shape index: {}]   ;;  %s3608_s3 = inlined_call_operand.vmem [shape: bf16[2,32,32], index: 3, kind: input, shape index: {}]   ;;  %s3609_s4 = inlined_call_operand.vmem [shape: f32[2,1,32], index: 4, kind: input, shape index: {}]   ;;  %s3610_s5 = inlined_call_operand.vmem [shape: f32[2,1,32], index: 5, kind: input, shape index: {}]   ;;  %s3611_s6 = inlined_call_operand.vmem [shape: f32[2,1,32], index: 6, kind: input, shape index: {}]   ;;  %s3612_s7 = inlined_call_operand.vmem [shape: bf16[2,32,128], index: 7, kind: input, shape index: {}]   ;;  %s3613_s8 = inlined_call_operand.vmem [shape: f32[2,1,128], index: 8, kind: input, shape index: {}]   ;;  %s3614_s9 = inlined_call_operand.vmem [shape: bf16[2,128,32], index: 9, kind: input, shape index: {}]   ;;  %s3615_s10 = inlined_call_operand.vmem [shape: f32[2,1,32], index: 10, kind: input, shape index: {}]   ;;  %s3616_s11 = inlined_call_operand.vmem [shape: f32[2,1,32], index: 11, kind: input, shape index: {}]   ;;  %s3617_s12 = inlined_call_operand.vmem [shape: f32[2,1,32], index: 12, kind: input, shape index: {}]   ;;  %s3618_s13 = inlined_call_operand.vmem [shape: bf16[32,128], index: 13, kind: input, shape index: {}]   ;;  %s3619_s14 = inlined_call_operand.vmem [shape: f32[1,128], index: 14, kind: input, shape index: {}]   ;;  %s3620_s15 = inlined_call_operand.hbm [shape: f32[2,128], index: 15, kind: output, shape index: {}]  }
   0x1   :  { %3625 = sst [smem:[#allocation9_spill]] %s3605_s0 }
   0x2   :  { %3626 = sst [smem:[#allocation10_spill]] %s3606_s1 }
   0x3   :  { %3627 = sst [smem:[#allocation11_spill]] %s3608_s3 }
   0x4   :  { %3628 = sst [smem:[#allocation12_spill]] %s3618_s13 }
   0x5   :  { %3629 = sst [smem:[#allocation13_spill]] %s3619_s14 }
   0x6   :  { %3630 = sst [smem:[#allocation14_spill]] %s3620_s15 }
   0x7   :  { %20 = vsyncpa [#allocation4], 0  ;;  %s3175_s18 = smov 0   ;;  %s3177_s19 = smov 0  }
   0x8   :  { %s3179_s20 = smov 0  }
   0x9 LB: > { %3631 = sst [smem:[#allocation6_spill]] %s3070_s19  ;;  %s35_s22 = sadd.s32 1, %s3070_s19  ;;  %s3074_s20 = sphi %s3179_s20, %s26_s20   ;;  %s3070_s19 = sphi %s3177_s19, %s3651_s19   ;;  %s3066_s18 = sphi %s3175_s18, %s3650_s18  }
   0xa   : > { %3632 = sst [smem:[#allocation7_spill]] %s3074_s20  ;;  %p36_p0 = scmp.ge.s32.totalorder %s35_s22, 2 }
   0xb   : > { %p2573_p1 = scmp.ge.s32.totalorder %s3074_s20, 1  ;;  %p555_p2 = scmp.lt.s32.totalorder %s3074_s20, 3 }
   0xc   : > { %s3653_s22 = smov (%p36_p0, %s35_s22), 0 }
   0xd   : > { %3633 = sst [smem:[#allocation8_spill]] %s3653_s22  ;;  %p556_p3 = pnand %p2573_p1, %p555_p2 }
   0xe   : > { %p648_p4 = scmp.lt.s32.totalorder (!%p556_p3), %s3066_s18, 1  ;;  %s3634_s1 = sld [smem:[#allocation10_spill]] (!%p556_p3) }
   0xf   : > { %559 = sbr.rel (%p556_p3) target bundleno = 4248 (0x1098), region = 80  ;;  %s3635_s3 = sld [smem:[#allocation11_spill]] (!%p556_p3) }
  0x10   : > { %p2582_p5 = scmp.ne.s32.totalorder (!%p556_p3), %s3066_s18, 0 }
  0x14   : > { %s3198_s23 = scalar_select %p648_p4, %s3066_s18, 1 }
  0x15   : > { %s3636_s19 = sld [smem:[#allocation9_spill]] (!%p2582_p5) }
  0x16   : > { %s2636_s24 = sshll.u32 %s3198_s23, 4  ;;  %s685_s0 = scalar_lea.vmem %s3615_s10, %s3198_s23 }
  0x17   : > { %s652_s30 = scalar_lea.vmem %s3634_s1, %s2636_s24  ;;  %s3211_s21 = scalar_lea.vmem %s3635_s3, %s2636_s24 }
  0x18   : > { %s3228_s29 = scalar_lea.vmem %s3612_s7, %s2636_s24  ;;  %s2639_s3 = sshll.u32 %s3198_s23, 6 }
  0x19   : > { %s3238_s15 = scalar_lea.vmem %s3614_s9, %s2639_s3  ;;  %s688_s27 = scalar_lea.vmem %s3616_s11, %s3198_s23 }
  0x1a   : > { %s691_s13 = scalar_lea.vmem %s3617_s12, %s3198_s23  ;;  %696 = sbr.rel (%p2582_p5) target bundleno = 34 (0x22), region = 84 }
  0x1b   : > { %s3637_s22 = smov (!%p2582_p5), %s3636_s19 }
  0x1f   : > { %v697_v0 = vld [vmem:[%s3636_s19] sm:$0xff]  ;;  %vm701_vm0 = vcmask 261120   ;;  %v698_v1 = vld [vmem:[%s3637_s22 + $0x8] sm:$0xff]  ;;  %v699_v2 = vld [vmem:[%s3637_s22 + $0x10] sm:$0xff] }
  0x20   : > { %702 = vst.msk [vmem:[#allocation2] sm:$0xff] %vm701_vm0, %v697_v0  ;;  %703 = vst.msk [vmem:[#allocation2 + $0x8] sm:$0xff] %vm701_vm0, %v698_v1  ;;  %v700_v3 = vld [vmem:[%s3637_s22 + $0x18] sm:$0xff] }
  0x21   : > { %704 = vst.msk [vmem:[#allocation2 + $0x10] sm:$0xff] %vm701_vm0, %v699_v2  ;;  %705 = vst.msk [vmem:[#allocation2 + $0x18] sm:$0xff] %vm701_vm0, %v700_v3 }
  0x22 PF: > { %v2924_v4 = vld [vmem:[%s652_s30 + $0x8] sm:$0xff]   ;;  %v2925_v5 = vld [vmem:[%s652_s30] sm:$0xff]   ;;  %vm735_vm1 = vcmask 261120   ;;  %v3076_v12 = vmov 0.0   ;;  %vm3077_vm2 = vmmov 0   ;;  %s3638_s24 = scalar_lea.vmem %s3607_s2, %s3198_s23  ;;  %s3078_s28 = smov 96   ;;  %v791_v28 = vlaneseq }
  0x23   : > { %2697 = vmatprep.subr.bf16.mxu0 %v2924_v4  ;;  %2717 = vmatprep.subr.bf16.mxu1 %v3076_v12  ;;  %v2583_v16 = vld [vmem:[%s3638_s24] ss:$0 sm:$0xff]  ;;  %vm799_vm3 = vcmask 64512   ;;  %vm907_vm5 = vcmask 130048   ;;  %s3079_s16 = smov 64   ;;  %s3080_s17 = smov 88  }
  0x24   : > { %2698 = vmatpush3.bf16.msra.mxu0 %v2924_v4  ;;  %2719 = vmatprep.mubr.msk.bf16.mxu1 %vm3077_vm2, %v3076_v12  ;;  %v3296_v29 = vand.u32 127, %v791_v28  ;;  %s3081_s19 = smov 120   ;;  %s3082_s3 = smov 56   ;;  %vm1854_vm6 = vcmask 195584  }
  0x25   : > { %2699 = vmatprep.subr.bf16.mxu0 %v2925_v5  ;;  %s3083_s14 = smov 80   ;;  %s3084_s20 = smov 112  }
  0x26   : > { %vm793_vm4 = vcmp.lt.s32.totalorder %v3296_v29, 9  ;;  %s3085_s26 = smov 48   ;;  %s3086_s25 = smov 72  }
  0x27   : > { %v706_v6 = vld [vmem:[#allocation2] sm:$0xff]  ;;  %v707_v7 = vld [vmem:[#allocation2 + $0x8] sm:$0xff]  ;;  %s3087_s1 = smov 104   ;;  %s3088_s30 = smov 40  }
  0x28   : > { %v708_v8 = vld [vmem:[#allocation2 + $0x10] sm:$0xff]  ;;  %v714_v9 = vpack.c.bf16 %v707_v7, %v706_v6  ;;  %v709_v10 = vld [vmem:[#allocation2 + $0x18] sm:$0xff]  ;;  %2700 = vmatpush3.bf16.msra.mxu0 %v2925_v5  ;;  %s3089_s24 = smov 8   ;;  %p2627_p6 = scmp.ne.s32.totalorder %s3066_s18, 1 }
  0x29   : > { %v715_v11 = vpack.c.bf16 %v709_v10, %v708_v8  ;;  %2705 = vmatprep.subr.bf16.mxu0 %v3076_v12 }
  0x2a   : > { %2701 = vmatprep.mubr.msk.bf16.mxu0 %vm735_vm1, %v714_v9 }
  0x2b   : > { %2702 = vmatmul.mubr.msk.bf16.vlgmr.msra.gmra.mxu0 %vm735_vm1, %v715_v11 }
  0x2c   : > { %2707 = vmatprep.mubr.msk.bf16.mxu0 %vm3077_vm2, %v3076_v12 }
  0xeb   : > { %v2703_v13 = vpop.f32.mrf.mxu0 }
  0xec   : > { %v785_v22 = vadd.f32 %v2703_v13, %v2583_v16 }
  0xed   : > { %v776_v14 = vpop.f32.mrf.mxu0 }
  0xee   : > { %v777_v18 = vadd.f32 %v2583_v16, %v776_v14 }
  0xef   : > { %v2704_v15 = vpop.f32.mrf.mxu0 }
  0xf0   : > { %v788_v20 = vadd.f32 %v2704_v15, %v2583_v16 }
  0xf1   : > { %v779_v17 = vpop.f32.mrf.mxu0 }
  0xf2   : > { %v780_v19 = vadd.f32 %v2583_v16, %v779_v17  ;;  %v3281_v23 = vpack.c.bf16 %v788_v20, %v785_v22 }
  0xf4   : > { %v3278_v21 = vpack.c.bf16 %v780_v19, %v777_v18 }
  0xf6   : > { %797 = vrot.lane.b32.xlu0 %v3278_v21, %s3078_s28 }
  0xfa   : > { %848 = vrot.lane.b32.xlu0 %v3281_v23, %s3078_s28  ;;  %s3090_s28 = smov 16  }
 0x168   : > { %v798_v24 = vpop.permute.xlu0 %797 }
 0x169   : > { %v804_v25 = vsel %vm799_vm3, %v798_v24, 0 }
 0x16a   : > { %2706 = vmatpush3.bf16.xpose.msra.mxu0 %v804_v25 }
 0x16b   : > { %2711 = vmatprep.subr.bf16.mxu0 %v3076_v12 }
 0x16c   : > { %v849_v26 = vpop.permute.xlu0 %848 }
 0x16d   : > { %v854_v27 = vsel %vm799_vm3, %v849_v26, 0 }
 0x171   : > { %2708 = vmatmul.mubr.msk.bf16.vlgmr.msra.gmra.mxu0 %vm799_vm3, %v3278_v21 }
 0x172   : > { %2712 = vmatpush3.bf16.xpose.msra.mxu0 %v854_v27  ;;  %2713 = vmatprep.mubr.msk.bf16.mxu0 %vm3077_vm2, %v3076_v12 }
 0x173   : > { %2723 = vmatprep.subr.bf16.mxu0 %v3076_v12 }
 0x179   : > { %2714 = vmatmul.mubr.msk.bf16.vlgmr.msra.gmra.mxu0 %vm799_vm3, %v3281_v23 }
 0x17a   : > { %2725 = vmatprep.mubr.msk.bf16.mxu0 %vm3077_vm2, %v3076_v12 }
 0x231   : > { %v840_v30 = vpop.f32.mrf.mxu0 }
 0x232   : > { %v897_v31 = vmul.f32 0.35355338, %v840_v30 }
 0x233   : > { %v2709_v32 = vpop.f32.mrf.mxu0 }
 0x234   : > { %v903_v33 = vsel %vm793_vm4, %v897_v31, -1e+30 }
 0x235   : > { %v843_v34 = vpop.f32.mrf.mxu0  ;;  %v908_v35 = vsel %vm907_vm5, %v903_v33, -inf }
 0x236   : > { %v898_v36 = vmul.f32 0.35355338, %v843_v34  ;;  %909 = vmax.xlane.f32.xlu1 %v908_v35 }
 0x237   : > { %v2710_v37 = vpop.f32.mrf.mxu0 }
 0x238   : > { %v904_v38 = vsel %vm793_vm4, %v898_v36, -1e+30 }
 0x239   : > { %v890_v39 = vpop.f32.mrf.mxu0  ;;  %v911_v40 = vsel %vm907_vm5, %v904_v38, -inf }
 0x23a   : > { %v899_v41 = vmul.f32 0.35355338, %v890_v39  ;;  %912 = vmax.xlane.f32.xlu1 %v911_v40 }
 0x23b   : > { %v2715_v42 = vpop.f32.mrf.mxu0 }
 0x23c   : > { %v905_v43 = vsel %vm793_vm4, %v899_v41, -1e+30 }
 0x23d   : > { %v893_v44 = vpop.f32.mrf.mxu0  ;;  %v914_v45 = vsel %vm907_vm5, %v905_v43, -inf }
 0x23e   : > { %v900_v46 = vmul.f32 0.35355338, %v893_v44  ;;  %915 = vmax.xlane.f32.xlu0 %v914_v45 }
 0x23f   : > { %v2716_v47 = vpop.f32.mrf.mxu0 }
 0x240   : > { %v906_v48 = vsel %vm793_vm4, %v900_v46, -1e+30 }
 0x241   : > { %v917_v49 = vsel %vm907_vm5, %v906_v48, -inf }
 0x242   : > { %918 = vmax.xlane.f32.xlu1 %v917_v49 }
 0x253   : > { %954 = vrot.lane.b32.xlu1 %v3278_v21, %s3079_s16 }
 0x254   : > { %1001 = vrot.lane.b32.xlu0 %v3281_v23, %s3079_s16  ;;  %s3091_s16 = smov 24  }
 0x257   : > { %1050 = vrot.lane.b32.xlu1 %v3278_v21, %s3080_s17 }
 0x25b   : > { %1101 = vrot.lane.b32.xlu1 %v3281_v23, %s3080_s17 }
 0x2bf   : > { %v910_v50 = vpop.xlane.xlu1 %909 }
 0x2c0   : > { %v920_v51 = vsub.f32 %v903_v33, %v910_v50 }
 0x2c2   : > { %v924_v52 = vmul.f32 1.442695, %v920_v51 }
 0x2c3   : > { %v913_v53 = vpop.xlane.xlu1 %912 }
 0x2c4   : > { %2938 = vpow2.f32 %v924_v52  ;;  %v921_v54 = vsub.f32 %v904_v38, %v913_v53 }
 0x2c6   : > { %v926_v55 = vmul.f32 1.442695, %v921_v54 }
 0x2c7   : > { %v916_v56 = vpop.xlane.xlu0 %915 }
 0x2c8   : > { %2940 = vpow2.f32 %v926_v55  ;;  %v922_v57 = vsub.f32 %v905_v43, %v916_v56 }
 0x2ca   : > { %v928_v58 = vmul.f32 1.442695, %v922_v57 }
 0x2cb   : > { %v1002_v59 = vpop.permute.xlu0 %1001  ;;  %v919_v60 = vpop.xlane.xlu1 %918 }
 0x2cc   : > { %2942 = vpow2.f32 %v928_v58  ;;  %v923_v61 = vsub.f32 %v906_v48, %v919_v60  ;;  %2724 = vmatpush3.bf16.msra.mxu0 %v1002_v59 }
 0x2cd   : > { %2735 = vmatprep.subr.bf16.mxu0 %v3076_v12 }
 0x2ce   : > { %v930_v62 = vmul.f32 1.442695, %v923_v61 }
 0x2cf   : > { %v955_v63 = vpop.permute.xlu1 %954 }
 0x2d0   : > { %2944 = vpow2.f32 %v930_v62  ;;  %2718 = vmatpush3.bf16.msra.mxu1 %v955_v63 }
 0x2d1   : > { %v2939_v0 = vpop.eup %2938  ;;  %2729 = vmatprep.subr.bf16.mxu1 %v3076_v12 }
 0x2d2   : > { %v932_v1 = vsel %vm907_vm5, %v2939_v0, 0.0 }
 0x2d3   : > { %933 = vadd.xlane.f32.xlu1 %v932_v1  ;;  %v1051_v8 = vpop.permute.xlu1 %1050 }
 0x2d4   : > { %v1056_v20 = vsel %vm799_vm3, %v1051_v8, 0 }
 0x2d5   : > { %v2941_v2 = vpop.eup %2940 }
 0x2d6   : > { %v935_v3 = vsel %vm907_vm5, %v2941_v2, 0.0 }
 0x2d7   : > { %936 = vadd.xlane.f32.xlu1 %v935_v3  ;;  %v1102_v9 = vpop.permute.xlu1 %1101 }
 0x2d8   : > { %v1107_v30 = vsel %vm799_vm3, %v1102_v9, 0 }
 0x2d9   : > { %v2943_v4 = vpop.eup %2942 }
 0x2da   : > { %v938_v5 = vsel %vm907_vm5, %v2943_v4, 0.0 }
 0x2db   : > { %939 = vadd.xlane.f32.xlu1 %v938_v5 }
 0x2dd   : > { %v2945_v6 = vpop.eup %2944 }
 0x2de   : > { %v941_v7 = vsel %vm907_vm5, %v2945_v6, 0.0 }
 0x2df   : > { %942 = vadd.xlane.f32.xlu1 %v941_v7 }
 0x2f0   : > { %1048 = vrot.lane.b32.xlu1 %v3278_v21, %s3081_s19 }
 0x2f4   : > { %1099 = vrot.lane.b32.xlu1 %v3281_v23, %s3081_s19  ;;  %s3639_s19 = scalar_lea.vmem %s3609_s4, %s3198_s23 }
 0x35c   : > { %v934_v10 = vpop.xlane.xlu1 %933 }
 0x35d   : > { %2946 = vrcp.f32 %v934_v10 }
 0x360   : > { %v937_v11 = vpop.xlane.xlu1 %936 }
 0x361   : > { %2948 = vrcp.f32 %v937_v11 }
 0x364   : > { %v940_v13 = vpop.xlane.xlu1 %939 }
 0x365   : > { %2950 = vrcp.f32 %v940_v13 }
 0x368   : > { %v943_v14 = vpop.xlane.xlu1 %942 }
 0x369   : > { %2952 = vrcp.f32 %v943_v14 }
 0x36a   : > { %v2947_v15 = vpop.eup %2946 }
 0x36b   : > { %v948_v17 = vmul.f32 %v2947_v15, %v2939_v0 }
 0x36c   : > { %v1049_v28 = vpop.permute.xlu1 %1048 }
 0x36e   : > { %v2949_v16 = vpop.eup %2948 }
 0x36f   : > { %v949_v18 = vmul.f32 %v2949_v16, %v2941_v2 }
 0x370   : > { %v1100_v31 = vpop.permute.xlu1 %1099 }
 0x371   : > { %v952_v19 = vpack.c.bf16 %v949_v18, %v948_v17 }
 0x372   : > { %v2951_v22 = vpop.eup %2950 }
 0x373   : > { %2720 = vmatmul.mubr.msk.bf16.vlgmr.msra.gmra.mxu1 %vm907_vm5, %v952_v19  ;;  %v950_v25 = vmul.f32 %v2951_v22, %v2943_v4 }
 0x374   : > { %2730 = vmatpush3.bf16.xpose.msra.mxu1 %v1056_v20  ;;  %2731 = vmatprep.mubr.msk.bf16.mxu1 %vm3077_vm2, %v3076_v12 }
 0x375   : > { %2741 = vmatprep.subr.bf16.mxu1 %v3076_v12 }
 0x376   : > { %v2953_v24 = vpop.eup %2952 }
 0x377   : > { %v951_v26 = vmul.f32 %v2953_v24, %v2945_v6 }
 0x379   : > { %v953_v27 = vpack.c.bf16 %v951_v26, %v950_v25 }
 0x37b   : > { %2726 = vmatmul.mubr.msk.bf16.vlgmr.msra.gmra.mxu0 %vm907_vm5, %v953_v27  ;;  %2732 = vmatmul.mubr.msk.bf16.vlgmr.msra.gmra.mxu1 %vm799_vm3, %v1049_v28 }
 0x37c   : > { %2736 = vmatpush3.bf16.xpose.msra.mxu0 %v1107_v30  ;;  %2737 = vmatprep.mubr.msk.bf16.mxu0 %vm3077_vm2, %v3076_v12 }
 0x37d   : > { %2747 = vmatprep.subr.bf16.mxu0 %v3076_v12  ;;  %2743 = vmatprep.mubr.msk.bf16.mxu1 %vm3077_vm2, %v3076_v12 }
 0x383   : > { %2738 = vmatmul.mubr.msk.bf16.vlgmr.msra.gmra.mxu0 %vm799_vm3, %v1100_v31 }
 0x384   : > { %2749 = vmatprep.mubr.msk.bf16.mxu0 %vm3077_vm2, %v3076_v12 }
 0x433   : > { %v3339_v32 = vpop.f32.mrf.mxu1 }
 0x435   : > { %v2721_v33 = vpop.f32.mrf.mxu1 }
 0x437   : > { %v3341_v34 = vpop.f32.mrf.mxu1 }
 0x439   : > { %v2722_v35 = vpop.f32.mrf.mxu1 }
 0x43b   : > { %v3343_v36 = vpop.f32.mrf.mxu0  ;;  %v1092_v37 = vpop.f32.mrf.mxu1 }
 0x43c   : > { %v1150_v38 = vmul.f32 0.35355338, %v1092_v37 }
 0x43d   : > { %v2727_v39 = vpop.f32.mrf.mxu0  ;;  %v2733_v40 = vpop.f32.mrf.mxu1 }
 0x43e   : > { %v1154_v41 = vsel %vm793_vm4, %v1150_v38, -1e+30 }
 0x43f   : > { %v3347_v42 = vpop.f32.mrf.mxu0  ;;  %v1095_v43 = vpop.f32.mrf.mxu1  ;;  %v1158_v44 = vsel %vm907_vm5, %v1154_v41, -inf }
 0x440   : > { %v1151_v45 = vmul.f32 0.35355338, %v1095_v43  ;;  %1159 = vmax.xlane.f32.xlu0 %v1158_v44 }
 0x441   : > { %v2728_v46 = vpop.f32.mrf.mxu0  ;;  %v2734_v47 = vpop.f32.mrf.mxu1 }
 0x442   : > { %v1155_v48 = vsel %vm793_vm4, %v1151_v45, -1e+30 }
 0x443   : > { %v1143_v49 = vpop.f32.mrf.mxu0  ;;  %v1161_v50 = vsel %vm907_vm5, %v1155_v48, -inf }
 0x444   : > { %v1152_v51 = vmul.f32 0.35355338, %v1143_v49  ;;  %1162 = vmax.xlane.f32.xlu1 %v1161_v50 }
 0x445   : > { %v2739_v52 = vpop.f32.mrf.mxu0 }
 0x446   : > { %v1156_v53 = vsel %vm793_vm4, %v1152_v51, -1e+30 }
 0x447   : > { %v1146_v54 = vpop.f32.mrf.mxu0  ;;  %v1164_v55 = vsel %vm907_vm5, %v1156_v53, -inf }
 0x448   : > { %v1153_v56 = vmul.f32 0.35355338, %v1146_v54  ;;  %1165 = vmax.xlane.f32.xlu0 %v1164_v55 }
 0x449   : > { %v2740_v57 = vpop.f32.mrf.mxu0 }
 0x44a   : > { %v1157_v58 = vsel %vm793_vm4, %v1153_v56, -1e+30 }
 0x44b   : > { %v1167_v59 = vsel %vm907_vm5, %v1157_v58, -inf }
 0x44c   : > { %1168 = vmax.xlane.f32.xlu0 %v1167_v59 }
 0x455   : > { %1204 = vrot.lane.b32.xlu1 %v3278_v21, %s3082_s3 }
 0x4c9   : > { %v1160_v60 = vpop.xlane.xlu0 %1159 }
 0x4ca   : > { %v1170_v61 = vsub.f32 %v1154_v41, %v1160_v60 }
 0x4cc   : > { %v1174_v62 = vmul.f32 1.442695, %v1170_v61 }
 0x4cd   : > { %v1163_v63 = vpop.xlane.xlu1 %1162 }
 0x4ce   : > { %2954 = vpow2.f32 %v1174_v62  ;;  %v1171_v0 = vsub.f32 %v1155_v48, %v1163_v63 }
 0x4d0   : > { %v1176_v1 = vmul.f32 1.442695, %v1171_v0 }
 0x4d1   : > { %v1205_v2 = vpop.permute.xlu1 %1204  ;;  %v1166_v3 = vpop.xlane.xlu0 %1165 }
 0x4d2   : > { %2956 = vpow2.f32 %v1176_v1  ;;  %v1172_v4 = vsub.f32 %v1156_v53, %v1166_v3  ;;  %2742 = vmatpush3.bf16.msra.mxu1 %v1205_v2 }
 0x4d3   : > { %2753 = vmatprep.subr.bf16.mxu1 %v3076_v12 }
 0x4d4   : > { %v1178_v5 = vmul.f32 1.442695, %v1172_v4 }
 0x4d5   : > { %v1169_v6 = vpop.xlane.xlu0 %1168 }
 0x4d6   : > { %2958 = vpow2.f32 %v1178_v5  ;;  %v1173_v7 = vsub.f32 %v1157_v58, %v1169_v6 }
 0x4d8   : > { %v1180_v8 = vmul.f32 1.442695, %v1173_v7 }
 0x4da   : > { %2960 = vpow2.f32 %v1180_v8 }
 0x4db   : > { %v2955_v9 = vpop.eup %2954 }
 0x4dc   : > { %v1182_v10 = vsel %vm907_vm5, %v2955_v9, 0.0 }
 0x4dd   : > { %1183 = vadd.xlane.f32.xlu1 %v1182_v10 }
 0x4df   : > { %v2957_v11 = vpop.eup %2956 }
 0x4e0   : > { %v1185_v13 = vsel %vm907_vm5, %v2957_v11, 0.0 }
 0x4e1   : > { %1186 = vadd.xlane.f32.xlu0 %v1185_v13 }
 0x4e3   : > { %v2959_v14 = vpop.eup %2958 }
 0x4e4   : > { %v1188_v15 = vsel %vm907_vm5, %v2959_v14, 0.0 }
 0x4e5   : > { %1189 = vadd.xlane.f32.xlu1 %v1188_v15 }
 0x4e7   : > { %v2961_v16 = vpop.eup %2960 }
 0x4e8   : > { %v1191_v17 = vsel %vm907_vm5, %v2961_v16, 0.0 }
 0x4e9   : > { %1192 = vadd.xlane.f32.xlu0 %v1191_v17 }
 0x4f6   : > { %1300 = vrot.lane.b32.xlu1 %v3278_v21, %s3083_s14 }
 0x4fa   : > { %1351 = vrot.lane.b32.xlu1 %v3281_v23, %s3083_s14  ;;  %s3640_s14 = scalar_lea.vmem %s3610_s5, %s3198_s23 }
 0x4fe   : > { %1349 = vrot.lane.b32.xlu1 %v3281_v23, %s3084_s20 }
 0x4ff   : > { %1251 = vrot.lane.b32.xlu0 %v3281_v23, %s3082_s3 }
 0x503   : > { %1298 = vrot.lane.b32.xlu0 %v3278_v21, %s3084_s20 }
 0x566   : > { %v1184_v18 = vpop.xlane.xlu1 %1183 }
 0x567   : > { %2962 = vrcp.f32 %v1184_v18 }
 0x56a   : > { %v1187_v19 = vpop.xlane.xlu0 %1186 }
 0x56b   : > { %2964 = vrcp.f32 %v1187_v19 }
 0x56e   : > { %v1190_v20 = vpop.xlane.xlu1 %1189 }
 0x56f   : > { %2966 = vrcp.f32 %v1190_v20 }
 0x572   : > { %v1193_v22 = vpop.xlane.xlu0 %1192  ;;  %v1301_v30 = vpop.permute.xlu1 %1300 }
 0x573   : > { %2968 = vrcp.f32 %v1193_v22  ;;  %v1306_v33 = vsel %vm799_vm3, %v1301_v30, 0 }
 0x574   : > { %v2963_v24 = vpop.eup %2962 }
 0x575   : > { %v1198_v27 = vmul.f32 %v2963_v24, %v2955_v9 }
 0x576   : > { %v1252_v25 = vpop.permute.xlu0 %1251  ;;  %v1352_v40 = vpop.permute.xlu1 %1351 }
 0x577   : > { %2748 = vmatpush3.bf16.msra.mxu0 %v1252_v25  ;;  %v1357_v44 = vsel %vm799_vm3, %v1352_v40, 0 }
 0x578   : > { %v2965_v26 = vpop.eup %2964  ;;  %2759 = vmatprep.subr.bf16.mxu0 %v3076_v12 }
 0x579   : > { %v1199_v28 = vmul.f32 %v2965_v26, %v2957_v11 }
 0x57a   : > { %v1299_v43 = vpop.permute.xlu0 %1298  ;;  %v1350_v45 = vpop.permute.xlu1 %1349 }
 0x57b   : > { %v1202_v31 = vpack.c.bf16 %v1199_v28, %v1198_v27 }
 0x57c   : > { %v2967_v35 = vpop.eup %2966 }
 0x57d   : > { %2744 = vmatmul.mubr.msk.bf16.vlgmr.msra.gmra.mxu1 %vm907_vm5, %v1202_v31  ;;  %v1200_v38 = vmul.f32 %v2967_v35, %v2959_v14 }
 0x57e   : > { %2754 = vmatpush3.bf16.xpose.msra.mxu1 %v1306_v33  ;;  %2755 = vmatprep.mubr.msk.bf16.mxu1 %vm3077_vm2, %v3076_v12 }
 0x57f   : > { %2765 = vmatprep.subr.bf16.mxu1 %v3076_v12 }
 0x580   : > { %v2969_v37 = vpop.eup %2968 }
 0x581   : > { %v1201_v39 = vmul.f32 %v2969_v37, %v2961_v16 }
 0x583   : > { %v1203_v41 = vpack.c.bf16 %v1201_v39, %v1200_v38 }
 0x585   : > { %2750 = vmatmul.mubr.msk.bf16.vlgmr.msra.gmra.mxu0 %vm907_vm5, %v1203_v41  ;;  %2756 = vmatmul.mubr.msk.bf16.vlgmr.msra.gmra.mxu1 %vm799_vm3, %v1299_v43 }
 0x586   : > { %2760 = vmatpush3.bf16.xpose.msra.mxu0 %v1357_v44  ;;  %2761 = vmatprep.mubr.msk.bf16.mxu0 %vm3077_vm2, %v3076_v12 }
 0x587   : > { %2771 = vmatprep.subr.bf16.mxu0 %v3076_v12  ;;  %2767 = vmatprep.mubr.msk.bf16.mxu1 %vm3077_vm2, %v3076_v12 }
 0x58d   : > { %2762 = vmatmul.mubr.msk.bf16.vlgmr.msra.gmra.mxu0 %vm799_vm3, %v1350_v45 }
 0x58e   : > { %2773 = vmatprep.mubr.msk.bf16.mxu0 %vm3077_vm2, %v3076_v12 }
 0x63d   : > { %v3389_v46 = vpop.f32.mrf.mxu1 }
 0x63f   : > { %v2745_v47 = vpop.f32.mrf.mxu1 }
 0x641   : > { %v3391_v48 = vpop.f32.mrf.mxu1 }
 0x642   : > { %v2894_v49 = vpack.i.bf16 %v3391_v48, %v3389_v46 }
 0x643   : > { %v2746_v50 = vpop.f32.mrf.mxu1 }
 0x645   : > { %v3395_v51 = vpop.f32.mrf.mxu0  ;;  %v1342_v52 = vpop.f32.mrf.mxu1 }
 0x646   : > { %v1400_v53 = vmul.f32 0.35355338, %v1342_v52 }
 0x647   : > { %v2751_v54 = vpop.f32.mrf.mxu0  ;;  %v2757_v55 = vpop.f32.mrf.mxu1 }
 0x648   : > { %v1404_v56 = vsel %vm793_vm4, %v1400_v53, -1e+30 }
 0x649   : > { %v3399_v57 = vpop.f32.mrf.mxu0  ;;  %v1345_v58 = vpop.f32.mrf.mxu1  ;;  %v1408_v59 = vsel %vm907_vm5, %v1404_v56, -inf }
 0x64a   : > { %v2899_v60 = vpack.i.bf16 %v3399_v57, %v3395_v51  ;;  %v1401_v61 = vmul.f32 0.35355338, %v1345_v58  ;;  %1409 = vmax.xlane.f32.xlu0 %v1408_v59 }
 0x64b   : > { %v2752_v62 = vpop.f32.mrf.mxu0  ;;  %v2758_v63 = vpop.f32.mrf.mxu1 }
 0x64c   : > { %v1405_v0 = vsel %vm793_vm4, %v1401_v61, -1e+30 }
 0x64d   : > { %v1393_v1 = vpop.f32.mrf.mxu0  ;;  %v1411_v2 = vsel %vm907_vm5, %v1405_v0, -inf }
 0x64e   : > { %v1402_v3 = vmul.f32 0.35355338, %v1393_v1  ;;  %1412 = vmax.xlane.f32.xlu1 %v1411_v2 }
 0x64f   : > { %v2763_v4 = vpop.f32.mrf.mxu0 }
 0x650   : > { %v1406_v5 = vsel %vm793_vm4, %v1402_v3, -1e+30 }
 0x651   : > { %v1396_v6 = vpop.f32.mrf.mxu0  ;;  %v1414_v7 = vsel %vm907_vm5, %v1406_v5, -inf }
 0x652   : > { %v1403_v8 = vmul.f32 0.35355338, %v1396_v6  ;;  %1415 = vmax.xlane.f32.xlu0 %v1414_v7 }
 0x653   : > { %v2764_v9 = vpop.f32.mrf.mxu0 }
 0x654   : > { %v1407_v10 = vsel %vm793_vm4, %v1403_v8, -1e+30 }
 0x655   : > { %v1417_v11 = vsel %vm907_vm5, %v1407_v10, -inf }
 0x656   : > { %1418 = vmax.xlane.f32.xlu0 %v1417_v11 }
 0x65f   : > { %1454 = vrot.lane.b32.xlu1 %v3278_v21, %s3085_s26 }
 0x6d3   : > { %v1410_v13 = vpop.xlane.xlu0 %1409 }
 0x6d4   : > { %v1420_v14 = vsub.f32 %v1404_v56, %v1410_v13 }
 0x6d6   : > { %v1424_v15 = vmul.f32 1.442695, %v1420_v14 }
 0x6d7   : > { %v1413_v16 = vpop.xlane.xlu1 %1412 }
 0x6d8   : > { %2970 = vpow2.f32 %v1424_v15  ;;  %v1421_v17 = vsub.f32 %v1405_v0, %v1413_v16 }
 0x6da   : > { %v1426_v18 = vmul.f32 1.442695, %v1421_v17 }
 0x6db   : > { %v1455_v19 = vpop.permute.xlu1 %1454  ;;  %v1416_v20 = vpop.xlane.xlu0 %1415 }
 0x6dc   : > { %2972 = vpow2.f32 %v1426_v18  ;;  %v1422_v22 = vsub.f32 %v1406_v5, %v1416_v20  ;;  %2766 = vmatpush3.bf16.msra.mxu1 %v1455_v19 }
 0x6dd   : > { %2777 = vmatprep.subr.bf16.mxu1 %v3076_v12 }
 0x6de   : > { %v1428_v24 = vmul.f32 1.442695, %v1422_v22 }
 0x6df   : > { %v1419_v25 = vpop.xlane.xlu0 %1418 }
 0x6e0   : > { %2974 = vpow2.f32 %v1428_v24  ;;  %v1423_v26 = vsub.f32 %v1407_v10, %v1419_v25 }
 0x6e2   : > { %v1430_v27 = vmul.f32 1.442695, %v1423_v26 }
 0x6e4   : > { %2976 = vpow2.f32 %v1430_v27 }
 0x6e5   : > { %v2971_v28 = vpop.eup %2970 }
 0x6e6   : > { %v1432_v30 = vsel %vm907_vm5, %v2971_v28, 0.0 }
 0x6e7   : > { %1433 = vadd.xlane.f32.xlu1 %v1432_v30 }
 0x6e9   : > { %v2973_v31 = vpop.eup %2972 }
 0x6ea   : > { %v1435_v33 = vsel %vm907_vm5, %v2973_v31, 0.0 }
 0x6eb   : > { %1436 = vadd.xlane.f32.xlu0 %v1435_v33 }
 0x6ed   : > { %v2975_v35 = vpop.eup %2974 }
 0x6ee   : > { %v1438_v37 = vsel %vm907_vm5, %v2975_v35, 0.0 }
 0x6ef   : > { %1439 = vadd.xlane.f32.xlu1 %v1438_v37 }
 0x6f1   : > { %v2977_v38 = vpop.eup %2976 }
 0x6f2   : > { %v1441_v39 = vsel %vm907_vm5, %v2977_v38, 0.0 }
 0x6f3   : > { %1442 = vadd.xlane.f32.xlu0 %v1441_v39 }
 0x700   : > { %1550 = vrot.lane.b32.xlu1 %v3278_v21, %s3086_s25 }
 0x704   : > { %1601 = vrot.lane.b32.xlu1 %v3281_v23, %s3086_s25  ;;  %s3641_s25 = scalar_lea.vmem %s3611_s6, %s3198_s23 }
 0x708   : > { %1599 = vrot.lane.b32.xlu1 %v3281_v23, %s3087_s1 }
 0x709   : > { %1501 = vrot.lane.b32.xlu0 %v3281_v23, %s3085_s26 }
 0x70d   : > { %1548 = vrot.lane.b32.xlu0 %v3278_v21, %s3087_s1 }
 0x770   : > { %v1434_v40 = vpop.xlane.xlu1 %1433 }
 0x771   : > { %2978 = vrcp.f32 %v1434_v40 }
 0x774   : > { %v1437_v41 = vpop.xlane.xlu0 %1436 }
 0x775   : > { %2980 = vrcp.f32 %v1437_v41 }
 0x778   : > { %v1440_v43 = vpop.xlane.xlu1 %1439 }
 0x779   : > { %2982 = vrcp.f32 %v1440_v43 }
 0x77c   : > { %v1443_v44 = vpop.xlane.xlu0 %1442  ;;  %v1551_v54 = vpop.permute.xlu1 %1550 }
 0x77d   : > { %2984 = vrcp.f32 %v1443_v44  ;;  %v1556_v56 = vsel %vm799_vm3, %v1551_v54, 0 }
 0x77e   : > { %v2979_v45 = vpop.eup %2978 }
 0x77f   : > { %v1448_v52 = vmul.f32 %v2979_v45, %v2971_v28 }
 0x780   : > { %v1502_v47 = vpop.permute.xlu0 %1501  ;;  %v1602_v63 = vpop.permute.xlu1 %1601 }
 0x781   : > { %2772 = vmatpush3.bf16.msra.mxu0 %v1502_v47  ;;  %v1607_v2 = vsel %vm799_vm3, %v1602_v63, 0 }
 0x782   : > { %v2981_v50 = vpop.eup %2980  ;;  %2783 = vmatprep.subr.bf16.mxu0 %v3076_v12 }
 0x783   : > { %v1449_v53 = vmul.f32 %v2981_v50, %v2973_v31 }
 0x784   : > { %v1549_v1 = vpop.permute.xlu0 %1548  ;;  %v1600_v3 = vpop.permute.xlu1 %1599 }
 0x785   : > { %v1452_v55 = vpack.c.bf16 %v1449_v53, %v1448_v52 }
 0x786   : > { %v2983_v58 = vpop.eup %2982 }
 0x787   : > { %2768 = vmatmul.mubr.msk.bf16.vlgmr.msra.gmra.mxu1 %vm907_vm5, %v1452_v55  ;;  %v1450_v61 = vmul.f32 %v2983_v58, %v2975_v35 }
 0x788   : > { %2778 = vmatpush3.bf16.xpose.msra.mxu1 %v1556_v56  ;;  %2779 = vmatprep.mubr.msk.bf16.mxu1 %vm3077_vm2, %v3076_v12 }
 0x789   : > { %2789 = vmatprep.subr.bf16.mxu1 %v3076_v12 }
 0x78a   : > { %v2985_v59 = vpop.eup %2984 }
 0x78b   : > { %v1451_v62 = vmul.f32 %v2985_v59, %v2977_v38 }
 0x78d   : > { %v1453_v0 = vpack.c.bf16 %v1451_v62, %v1450_v61 }
 0x78f   : > { %2774 = vmatmul.mubr.msk.bf16.vlgmr.msra.gmra.mxu0 %vm907_vm5, %v1453_v0  ;;  %2780 = vmatmul.mubr.msk.bf16.vlgmr.msra.gmra.mxu1 %vm799_vm3, %v1549_v1 }
 0x790   : > { %2784 = vmatpush3.bf16.xpose.msra.mxu0 %v1607_v2  ;;  %2785 = vmatprep.mubr.msk.bf16.mxu0 %vm3077_vm2, %v3076_v12 }
 0x791   : > { %2795 = vmatprep.subr.bf16.mxu0 %v3076_v12  ;;  %2791 = vmatprep.mubr.msk.bf16.mxu1 %vm3077_vm2, %v3076_v12 }
 0x797   : > { %2786 = vmatmul.mubr.msk.bf16.vlgmr.msra.gmra.mxu0 %vm799_vm3, %v1600_v3 }
 0x798   : > { %2797 = vmatprep.mubr.msk.bf16.mxu0 %vm3077_vm2, %v3076_v12 }
 0x847   : > { %v3443_v4 = vpop.f32.mrf.mxu1 }
 0x849   : > { %v2769_v5 = vpop.f32.mrf.mxu1 }
 0x84b   : > { %v3445_v6 = vpop.f32.mrf.mxu1 }
 0x84c   : > { %v2904_v7 = vpack.i.bf16 %v3445_v6, %v3443_v4 }
 0x84d   : > { %v2770_v8 = vpop.f32.mrf.mxu1 }
 0x84f   : > { %v3449_v9 = vpop.f32.mrf.mxu0  ;;  %v1592_v10 = vpop.f32.mrf.mxu1 }
 0x850   : > { %v1650_v11 = vmul.f32 0.35355338, %v1592_v10  ;;  %v2926_v10 = vld [vmem:[%s3211_s21 + $0x8] sm:$0xff]  }
 0x851   : > { %v2775_v13 = vpop.f32.mrf.mxu0  ;;  %v2781_v14 = vpop.f32.mrf.mxu1 }
 0x852   : > { %v1654_v15 = vsel %vm793_vm4, %v1650_v11, -1e+30  ;;  %v2927_v13 = vld [vmem:[%s3211_s21] sm:$0xff]  }
 0x853   : > { %v1544_v16 = vpop.f32.mrf.mxu0  ;;  %v1595_v12 = vpop.f32.mrf.mxu1  ;;  %v1658_v17 = vsel %vm907_vm5, %v1654_v15, -inf }
 0x854   : > { %v2909_v18 = vpack.i.bf16 %v1544_v16, %v3449_v9  ;;  %v1651_v19 = vmul.f32 0.35355338, %v1595_v12  ;;  %1659 = vmax.xlane.f32.xlu0 %v1658_v17 }
 0x855   : > { %v2776_v20 = vpop.f32.mrf.mxu0  ;;  %v2782_v22 = vpop.f32.mrf.mxu1 }
 0x856   : > { %v1655_v24 = vsel %vm793_vm4, %v1651_v19, -1e+30 }
 0x857   : > { %v1643_v25 = vpop.f32.mrf.mxu0  ;;  %v1661_v26 = vsel %vm907_vm5, %v1655_v24, -inf }
 0x858   : > { %v1652_v27 = vmul.f32 0.35355338, %v1643_v25  ;;  %1662 = vmax.xlane.f32.xlu1 %v1661_v26 }
 0x859   : > { %v2787_v28 = vpop.f32.mrf.mxu0 }
 0x85a   : > { %v1656_v30 = vsel %vm793_vm4, %v1652_v27, -1e+30 }
 0x85b   : > { %v1646_v31 = vpop.f32.mrf.mxu0  ;;  %v1664_v33 = vsel %vm907_vm5, %v1656_v30, -inf }
 0x85c   : > { %v1653_v35 = vmul.f32 0.35355338, %v1646_v31  ;;  %1665 = vmax.xlane.f32.xlu0 %v1664_v33 }
 0x85d   : > { %v2788_v37 = vpop.f32.mrf.mxu0 }
 0x85e   : > { %v1657_v38 = vsel %vm793_vm4, %v1653_v35, -1e+30 }
 0x85f   : > { %v1667_v39 = vsel %vm907_vm5, %v1657_v38, -inf }
 0x860   : > { %1668 = vmax.xlane.f32.xlu0 %v1667_v39 }
 0x8dd   : > { %v1660_v40 = vpop.xlane.xlu0 %1659 }
 0x8de   : > { %v1670_v41 = vsub.f32 %v1654_v15, %v1660_v40 }
 0x8e0   : > { %v1674_v43 = vmul.f32 1.442695, %v1670_v41 }
 0x8e1   : > { %v1663_v44 = vpop.xlane.xlu1 %1662 }
 0x8e2   : > { %2986 = vpow2.f32 %v1674_v43  ;;  %v1671_v45 = vsub.f32 %v1655_v24, %v1663_v44 }
 0x8e4   : > { %v1676_v47 = vmul.f32 1.442695, %v1671_v45 }
 0x8e5   : > { %v1666_v50 = vpop.xlane.xlu0 %1665 }
 0x8e6   : > { %2988 = vpow2.f32 %v1676_v47  ;;  %v1672_v52 = vsub.f32 %v1656_v30, %v1666_v50 }
 0x8e8   : > { %v1678_v53 = vmul.f32 1.442695, %v1672_v52 }
 0x8e9   : > { %v1669_v54 = vpop.xlane.xlu0 %1668 }
 0x8ea   : > { %2990 = vpow2.f32 %v1678_v53  ;;  %v1673_v55 = vsub.f32 %v1657_v38, %v1669_v54 }
 0x8ec   : > { %v1680_v56 = vmul.f32 1.442695, %v1673_v55 }
 0x8ee   : > { %2992 = vpow2.f32 %v1680_v56 }
 0x8ef   : > { %v2987_v29 = vpop.eup %2986 }
 0x8f0   : > { %v1682_v58 = vsel %vm907_vm5, %v2987_v29, 0.0 }
 0x8f1   : > { %1683 = vadd.xlane.f32.xlu1 %v1682_v58 }
 0x8f3   : > { %v2989_v59 = vpop.eup %2988 }
 0x8f4   : > { %v1685_v61 = vsel %vm907_vm5, %v2989_v59, 0.0 }
 0x8f5   : > { %1686 = vadd.xlane.f32.xlu0 %v1685_v61 }
 0x8f7   : > { %v2991_v62 = vpop.eup %2990 }
 0x8f8   : > { %v1688_v63 = vsel %vm907_vm5, %v2991_v62, 0.0 }
 0x8f9   : > { %1689 = vadd.xlane.f32.xlu1 %v1688_v63 }
 0x8fb   : > { %v2993_v0 = vpop.eup %2992 }
 0x8fc   : > { %v1691_v1 = vsel %vm907_vm5, %v2993_v0, 0.0 }
 0x8fd   : > { %1692 = vadd.xlane.f32.xlu0 %v1691_v1 }
 0x90a   : > { %1704 = vrot.lane.b32.xlu1 %v3278_v21, %s3088_s30 }
 0x90e   : > { %2895 = vrot.lane.b32.xlu1 %v2894_v49, %s3089_s24 }
 0x912   : > { %2900 = vrot.lane.b32.xlu1 %v2899_v60, %s3089_s24  ;;  %s3642_s24 = scalar_lea.vmem %s3613_s8, %s3198_s23 }
 0x913   : > { %1751 = vrot.lane.b32.xlu0 %v3281_v23, %s3088_s30 }
 0x916   : > { %2910 = vrot.lane.b32.xlu1 %v2909_v18, %s3090_s28 }
 0x917   : > { %2905 = vrot.lane.b32.xlu0 %v2904_v7, %s3090_s28 }
 0x97a   : > { %v1684_v2 = vpop.xlane.xlu1 %1683 }
 0x97b   : > { %2994 = vrcp.f32 %v1684_v2 }
 0x97e   : > { %v1687_v21 = vpop.xlane.xlu0 %1686 }
 0x97f   : > { %2996 = vrcp.f32 %v1687_v21 }
 0x982   : > { %v1690_v3 = vpop.xlane.xlu1 %1689 }
 0x983   : > { %2998 = vrcp.f32 %v1690_v3  ;;  %v3018_v3 = vld [vmem:[#allocation2] sm:$0xff] }
 0x986   : > { %v1705_v46 = vpop.permute.xlu1 %1704  ;;  %v1693_v48 = vpop.xlane.xlu0 %1692 }
 0x987   : > { %3000 = vrcp.f32 %v1693_v48  ;;  %2790 = vmatpush3.bf16.msra.mxu1 %v1705_v46 }
 0x988   : > { %v2995_v51 = vpop.eup %2994  ;;  %2801 = vmatprep.subr.bf16.mxu1 %v2926_v10 }
 0x989   : > { %v1698_v60 = vmul.f32 %v2995_v51, %v2987_v29 }
 0x98a   : > { %v1752_v49 = vpop.permute.xlu0 %1751  ;;  %v2896_v24 = vpop.permute.xlu1 %2895 }
 0x98b   : > { %2796 = vmatpush3.bf16.msra.mxu0 %v1752_v49  ;;  %v2898_v27 = vunpack.i.h.bf16 %v2896_v24  ;;  %v2897_v28 = vunpack.i.l.bf16 %v2896_v24 }
 0x98c   : > { %v2997_v23 = vpop.eup %2996 }
 0x98d   : > { %v1699_v57 = vmul.f32 %v2997_v23, %v2989_v59  ;;  %v1847_v35 = vsel %vm799_vm3, %v3341_v34, %v2898_v27  ;;  %v1846_v37 = vsel %vm799_vm3, %v3339_v32, %v2897_v28 }
 0x98e   : > { %v2906_v25 = vpop.permute.xlu0 %2905  ;;  %v2901_v26 = vpop.permute.xlu1 %2900 }
 0x98f   : > { %v1702_v4 = vpack.c.bf16 %v1699_v57, %v1698_v60  ;;  %v2908_v30 = vunpack.i.h.bf16 %v2906_v25  ;;  %v2907_v31 = vunpack.i.l.bf16 %v2906_v25  ;;  %v2903_v47 = vunpack.i.h.bf16 %v2901_v26  ;;  %v3019_v57 = vld [vmem:[#allocation2 + $0x10] sm:$0xff] }
 0x990   : > { %v2999_v5 = vpop.eup %2998  ;;  %v2902_v50 = vunpack.i.l.bf16 %v2901_v26 }
 0x991   : > { %2792 = vmatmul.mubr.msk.bf16.vlgmr.msra.gmra.mxu1 %vm907_vm5, %v1702_v4  ;;  %v1700_v7 = vmul.f32 %v2999_v5, %v2991_v62  ;;  %v1851_v40 = vsel %vm907_vm5, %v1847_v35, %v2908_v30  ;;  %v1850_v41 = vsel %vm907_vm5, %v1846_v37, %v2907_v31  ;;  %v1849_v54 = vsel %vm799_vm3, %v3347_v42, %v2903_v47  ;;  %v2604_v42 = vld [vmem:[%s3639_s19] ss:$0 sm:$0xff]  ;;  %v3020_v4 = vld [vmem:[#allocation2 + $0x8] sm:$0xff] }
 0x992   : > { %2802 = vmatpush3.bf16.msra.mxu1 %v2926_v10  ;;  %v2911_v43 = vpop.permute.xlu1 %2910  ;;  %v1848_v55 = vsel %vm799_vm3, %v3343_v36, %v2902_v50  ;;  %v2928_v37 = vld [vmem:[%s3228_s29 + $0x8] sm:$0xff]  }
 0x993   : > { %2803 = vmatprep.subr.bf16.mxu1 %v2927_v13  ;;  %v2913_v53 = vunpack.i.h.bf16 %v2911_v43  ;;  %v2912_v34 = vunpack.i.l.bf16 %v2911_v43  ;;  %2809 = vmatprep.subr.bf16.mxu0 %v2928_v37  ;;  %v2933_v43 = vld [vmem:[%s3238_s15 + $0x20] sm:$0xff]  }
 0x994   : > { %v3001_v6 = vpop.eup %3000 }
 0x995   : > { %v1701_v8 = vmul.f32 %v3001_v6, %v2993_v0  ;;  %v1852_v58 = vsel %vm907_vm5, %v1848_v55, %v2912_v34  ;;  %v1853_v59 = vsel %vm907_vm5, %v1849_v54, %v2913_v53 }
 0x996   : > { %2804 = vmatpush3.bf16.msra.mxu1 %v2927_v13 }
 0x997   : > { %v1703_v9 = vpack.c.bf16 %v1701_v8, %v1700_v7  ;;  %v3021_v8 = vld [vmem:[#allocation2 + $0x18] sm:$0xff] }
 0x999   : > { %2798 = vmatmul.mubr.msk.bf16.vlgmr.msra.gmra.mxu0 %vm907_vm5, %v1703_v9 }
 0x99a   : > { %2810 = vmatpush3.bf16.msra.mxu0 %v2928_v37 }
 0xa51   : > { %v1744_v11 = vpop.f32.mrf.mxu1 }
 0xa53   : > { %v2793_v14 = vpop.f32.mrf.mxu1 }
 0xa55   : > { %v1747_v15 = vpop.f32.mrf.mxu1 }
 0xa56   : > { %v2914_v16 = vpack.i.bf16 %v1747_v15, %v1744_v11 }
 0xa57   : > { %v2794_v12 = vpop.f32.mrf.mxu1 }
 0xa58   : > { %2915 = vrot.lane.b32.xlu0 %v2914_v16, %s3091_s16 }
 0xa59   : > { %v1791_v17 = vpop.f32.mrf.mxu0 }
 0xa5b   : > { %v2799_v18 = vpop.f32.mrf.mxu0 }
 0xa5d   : > { %v1794_v19 = vpop.f32.mrf.mxu0 }
 0xa5e   : > { %v2919_v20 = vpack.i.bf16 %v1794_v19, %v1791_v17 }
 0xa5f   : > { %v2800_v22 = vpop.f32.mrf.mxu0 }
 0xa60   : > { %2920 = vrot.lane.b32.xlu1 %v2919_v20, %s3091_s16 }
 0xaca   : > { %v2916_v33 = vpop.permute.xlu0 %2915 }
 0xacb   : > { %v2918_v38 = vunpack.i.h.bf16 %v2916_v33  ;;  %v2917_v39 = vunpack.i.l.bf16 %v2916_v33 }
 0xacd   : > { %v1855_v44 = vsel %vm1854_vm6, %v1850_v41, %v2917_v39  ;;  %v1856_v45 = vsel %vm1854_vm6, %v1851_v40, %v2918_v38  ;;  %v2929_v38 = vld [vmem:[%s3228_s29] sm:$0xff]   ;;  %v2930_v39 = vld [vmem:[%s3238_s15 + $0x38] sm:$0xff]   ;;  %v2931_v40 = vld [vmem:[%s3238_s15 + $0x30] sm:$0xff]  }
 0xace   : > { %v1863_v52 = vpack.c.bf16 %v1856_v45, %v1855_v44  ;;  %2811 = vmatprep.subr.bf16.mxu0 %v2929_v38  ;;  %2817 = vmatprep.subr.bf16.mxu1 %v2930_v39  ;;  %v2932_v41 = vld [vmem:[%s3238_s15 + $0x28] sm:$0xff]   ;;  %v2934_v44 = vld [vmem:[%s3238_s15 + $0x18] sm:$0xff]  }
 0xacf   : > { %2812 = vmatpush3.bf16.msra.mxu0 %v2929_v38 }
 0xad0   : > { %2805 = vmatprep.mubr.msk.bf16.mxu1 %vm735_vm1, %v1863_v52 }
 0xad2   : > { %v2921_v32 = vpop.permute.xlu1 %2920 }
 0xad3   : > { %v2923_v56 = vunpack.i.h.bf16 %v2921_v32  ;;  %v2922_v29 = vunpack.i.l.bf16 %v2921_v32 }
 0xad5   : > { %v1858_v61 = vsel %vm1854_vm6, %v1853_v59, %v2923_v56  ;;  %v1857_v62 = vsel %vm1854_vm6, %v1852_v58, %v2922_v29 }
 0xad6   : > { %v1864_v63 = vpack.c.bf16 %v1858_v61, %v1857_v62  ;;  %v2609_v62 = vld [vmem:[%s3640_s14] ss:$0 sm:$0xff]  ;;  %s3644_s14 = sld [smem:[#allocation13_spill]] (!%p2627_p6) }
 0xad8   : > { %2806 = vmatmul.mubr.msk.bf16.vlgmr.msra.gmra.mxu1 %vm735_vm1, %v1864_v63 }
 0xad9   : > { %2818 = vmatpush3.bf16.msra.mxu1 %v2930_v39 }
 0xada   : > { %2819 = vmatprep.subr.bf16.mxu1 %v2931_v40 }
 0xadd   : > { %2820 = vmatpush3.bf16.msra.mxu1 %v2931_v40 }
 0xade   : > { %2821 = vmatprep.subr.bf16.mxu1 %v2932_v41 }
 0xae1   : > { %2822 = vmatpush3.bf16.msra.mxu1 %v2932_v41 }
 0xae2   : > { %2823 = vmatprep.subr.bf16.mxu1 %v2933_v43 }
 0xae5   : > { %2824 = vmatpush3.bf16.msra.mxu1 %v2933_v43 }
 0xae6   : > { %2825 = vmatprep.subr.bf16.mxu1 %v2934_v44 }
 0xae9   : > { %2826 = vmatpush3.bf16.msra.mxu1 %v2934_v44 }
 0xb98   : > { %v2807_v0 = vpop.f32.mrf.mxu1 }
 0xb99   : > { %v1933_v1 = vadd.f32 %v2807_v0, %v2604_v42 }
 0xb9a   : > { %v1924_v36 = vpop.f32.mrf.mxu1 }
 0xb9b   : > { %v1925_v2 = vadd.f32 %v2604_v42, %v1924_v36  ;;  %v1941_v60 = vadd.f32 %v3019_v57, %v1933_v1 }
 0xb9c   : > { %v2808_v21 = vpop.f32.mrf.mxu1 }
 0xb9d   : > { %v1939_v46 = vadd.f32 %v3018_v3, %v1925_v2  ;;  %v1936_v49 = vadd.f32 %v2808_v21, %v2604_v42  ;;  %v1951_v7 = vsel %vm735_vm1, %v1941_v60, 0.0  ;;  %v2610_v2 = vld [vmem:[%s3641_s25] ss:$0 sm:$0xff] }
 0xb9e   : > { %v1927_v48 = vpop.f32.mrf.mxu1 }
 0xb9f   : > { %v1928_v51 = vadd.f32 %v2604_v42, %v1927_v48  ;;  %v1945_v23 = vsel %vm735_vm1, %v1939_v46, 0.0  ;;  %v1942_v9 = vadd.f32 %v3021_v8, %v1936_v49  ;;  %v2937_v8 = vld [vmem:[%s3238_s15] sm:$0xff]  }
 0xba0   : > { %1946 = vadd.xlane.f32.xlu0 %v1945_v23 }
 0xba1   : > { %v1940_v5 = vadd.f32 %v3020_v4, %v1928_v51  ;;  %v1954_v10 = vsel %vm735_vm1, %v1942_v9, 0.0 }
 0xba3   : > { %v1948_v6 = vsel %vm735_vm1, %v1940_v5, 0.0 }
 0xba4   : > { %1949 = vadd.xlane.f32.xlu1 %v1948_v6  ;;  %1952 = vadd.xlane.f32.xlu0 %v1951_v7  ;;  %v2935_v6 = vld [vmem:[%s3238_s15 + $0x10] sm:$0xff]   ;;  %v2936_v7 = vld [vmem:[%s3238_s15 + $0x8] sm:$0xff]  }
 0xba5   : > { %2827 = vmatprep.subr.bf16.mxu1 %v2935_v6 }
 0xba6   : > { %2828 = vmatpush3.bf16.msra.mxu1 %v2935_v6 }
 0xba7   : > { %2829 = vmatprep.subr.bf16.mxu1 %v2936_v7 }
 0xba8   : > { %1955 = vadd.xlane.f32.xlu0 %v1954_v10 }
 0xbaa   : > { %2830 = vmatpush3.bf16.msra.mxu1 %v2936_v7 }
 0xbab   : > { %2831 = vmatprep.subr.bf16.mxu1 %v2937_v8 }
 0xbae   : > { %2832 = vmatpush3.bf16.msra.mxu1 %v2937_v8 }
 0xc29   : > { %v1947_v11 = vpop.xlane.xlu0 %1946 }
 0xc2a   : > { %v1958_v13 = vmul.f32 0.03125, %v1947_v11  ;;  %v2611_v11 = vld [vmem:[%s3642_s24] ss:$0 sm:$0xff] }
 0xc2c   : > { %v1962_v14 = vsub.f32 %v1939_v46, %v1958_v13 }
 0xc2d   : > { %v1950_v15 = vpop.xlane.xlu1 %1949  ;;  %v1953_v16 = vpop.xlane.xlu0 %1952 }
 0xc2e   : > { %v1959_v12 = vmul.f32 0.03125, %v1950_v15  ;;  %v1960_v17 = vmul.f32 0.03125, %v1953_v16  ;;  %v1966_v18 = vmul.f32 %v1962_v14, %v1962_v14 }
 0xc30   : > { %v1963_v19 = vsub.f32 %v1940_v5, %v1959_v12  ;;  %v1964_v20 = vsub.f32 %v1941_v60, %v1960_v17  ;;  %v1970_v22 = vsel %vm735_vm1, %v1966_v18, 0.0 }
 0xc31   : > { %1971 = vadd.xlane.f32.xlu1 %v1970_v22  ;;  %v1956_v24 = vpop.xlane.xlu0 %1955 }
 0xc32   : > { %v1961_v25 = vmul.f32 0.03125, %v1956_v24  ;;  %v1967_v26 = vmul.f32 %v1963_v19, %v1963_v19  ;;  %v1968_v27 = vmul.f32 %v1964_v20, %v1964_v20 }
 0xc34   : > { %v1965_v28 = vsub.f32 %v1942_v9, %v1961_v25  ;;  %v1973_v30 = vsel %vm735_vm1, %v1967_v26, 0.0  ;;  %v1976_v31 = vsel %vm735_vm1, %v1968_v27, 0.0  ;;  %v2616_v27 = vld [vmem:[%s685_s0] ss:$0 sm:$0xff] }
 0xc35   : > { %1974 = vadd.xlane.f32.xlu0 %v1973_v30  ;;  %1977 = vadd.xlane.f32.xlu1 %v1976_v31 }
 0xc36   : > { %v1969_v33 = vmul.f32 %v1965_v28, %v1965_v28 }
 0xc38   : > { %v1979_v35 = vsel %vm735_vm1, %v1969_v33, 0.0 }
 0xc39   : > { %1980 = vadd.xlane.f32.xlu0 %v1979_v35 }
 0xcba   : > { %v1972_v45 = vpop.xlane.xlu1 %1971 }
 0xcbb   : > { %v1982_v47 = vmul.f32 0.03125, %v1972_v45 }
 0xcbd   : > { %v1986_v50 = vadd.f32 1e-05, %v1982_v47 }
 0xcbe   : > { %v1978_v52 = vpop.xlane.xlu1 %1977  ;;  %v1975_v53 = vpop.xlane.xlu0 %1974 }
 0xcbf   : > { %3002 = vrsqrt.f32 %v1986_v50  ;;  %v1984_v34 = vmul.f32 0.03125, %v1978_v52  ;;  %v1983_v32 = vmul.f32 0.03125, %v1975_v53 }
 0xcc1   : > { %v1988_v54 = vadd.f32 1e-05, %v1984_v34  ;;  %v1987_v55 = vadd.f32 1e-05, %v1983_v32 }
 0xcc2   : > { %v1981_v56 = vpop.xlane.xlu0 %1980 }
 0xcc3   : > { %3004 = vrsqrt.f32 %v1988_v54  ;;  %v1985_v29 = vmul.f32 0.03125, %v1981_v56 }
 0xcc4   : > { %3006 = vrsqrt.f32 %v1987_v55 }
 0xcc5   : > { %v1989_v58 = vadd.f32 1e-05, %v1985_v29 }
 0xcc7   : > { %3008 = vrsqrt.f32 %v1989_v58 }
 0xccc   : > { %v3003_v59 = vpop.eup %3002 }
 0xccd   : > { %v1994_v61 = vmul.f32 %v3003_v59, %v1962_v14 }
 0xccf   : > { %v2004_v1 = vmul.f32 %v2609_v62, %v1994_v61 }
 0xcd0   : > { %v3005_v63 = vpop.eup %3004 }
 0xcd1   : > { %v3007_v0 = vpop.eup %3006  ;;  %v1996_v42 = vmul.f32 %v3005_v63, %v1964_v20  ;;  %v2014_v49 = vadd.f32 %v2610_v2, %v2004_v1 }
 0xcd2   : > { %v1995_v36 = vmul.f32 %v3007_v0, %v1963_v19 }
 0xcd3   : > { %v2006_v48 = vmul.f32 %v2609_v62, %v1996_v42 }
 0xcd4   : > { %v3009_v21 = vpop.eup %3008  ;;  %v2005_v3 = vmul.f32 %v2609_v62, %v1995_v36 }
 0xcd5   : > { %v1997_v46 = vmul.f32 %v3009_v21, %v1965_v28  ;;  %v2016_v60 = vadd.f32 %v2610_v2, %v2006_v48 }
 0xcd6   : > { %v2015_v51 = vadd.f32 %v2610_v2, %v2005_v3 }
 0xcd7   : > { %v2007_v23 = vmul.f32 %v2609_v62, %v1997_v46 }
 0xcd8   : > { %v2022_v57 = vpack.c.bf16 %v2015_v51, %v2014_v49 }
 0xcd9   : > { %v2017_v4 = vadd.f32 %v2610_v2, %v2007_v23 }
 0xcda   : > { %2813 = vmatprep.mubr.msk.bf16.mxu0 %vm735_vm1, %v2022_v57 }
 0xcdb   : > { %v2023_v5 = vpack.c.bf16 %v2017_v4, %v2016_v60 }
 0xcdd   : > { %2814 = vmatmul.mubr.msk.bf16.vlgmr.msra.gmra.mxu0 %vm735_vm1, %v2023_v5 }
 0xd9d   : > { %v2815_v9 = vpop.f32.mrf.mxu0 }
 0xd9e   : > { %v2092_v16 = vadd.f32 %v2815_v9, %v2611_v11 }
 0xd9f   : > { %v2083_v10 = vpop.f32.mrf.mxu0 }
 0xda0   : > { %v2084_v14 = vadd.f32 %v2611_v11, %v2083_v10  ;;  %v2100_v22 = vmax.f32 %v2092_v16, 0.0  ;;  %v2625_v10 = vld [vmem:[%s688_s27] ss:$0 sm:$0xff]  ;;  %s3643_s27 = sld [smem:[#allocation12_spill]] (!%p2627_p6) }
 0xda1   : > { %v2816_v13 = vpop.f32.mrf.mxu0 }
 0xda2   : > { %v2095_v15 = vadd.f32 %v2816_v13, %v2611_v11  ;;  %v2098_v19 = vmax.f32 %v2084_v14, 0.0  ;;  %v2626_v13 = vld [vmem:[%s691_s13] ss:$0 sm:$0xff] }
 0xda3   : > { %v2086_v12 = vpop.f32.mrf.mxu0 }
 0xda4   : > { %v2087_v17 = vadd.f32 %v2611_v11, %v2086_v12  ;;  %v2101_v18 = vmax.f32 %v2095_v15, 0.0 }
 0xda6   : > { %v2099_v20 = vmax.f32 %v2087_v17, 0.0  ;;  %v2119_v25 = vpack.c.bf16 %v2101_v18, %v2100_v22 }
 0xda8   : > { %v2118_v24 = vpack.c.bf16 %v2099_v20, %v2098_v19 }
 0xdaa   : > { %2833 = vmatprep.mubr.bf16.mxu1 %v2118_v24 }
 0xdab   : > { %2834 = vmatmul.mubr.bf16.vlgmr.msra.gmra.mxu1 %v2119_v25 }
 0xe6b   : > { %v2835_v26 = vpop.f32.mrf.mxu1 }
 0xe6c   : > { %v2218_v30 = vadd.f32 %v2835_v26, %v2616_v27 }
 0xe6d   : > { %v2209_v28 = vpop.f32.mrf.mxu1 }
 0xe6e   : > { %v2210_v31 = vadd.f32 %v2616_v27, %v2209_v28  ;;  %v2226_v41 = vadd.f32 %v2218_v30, %v2016_v60 }
 0xe6f   : > { %v2836_v33 = vpop.f32.mrf.mxu1 }
 0xe70   : > { %v2224_v35 = vadd.f32 %v2210_v31, %v2014_v49  ;;  %v2221_v38 = vadd.f32 %v2836_v33, %v2616_v27  ;;  %v2236_v45 = vsel %vm735_vm1, %v2226_v41, 0.0 }
 0xe71   : > { %v2212_v37 = vpop.f32.mrf.mxu1 }
 0xe72   : > { %v2213_v39 = vadd.f32 %v2616_v27, %v2212_v37  ;;  %v2230_v40 = vsel %vm735_vm1, %v2224_v35, 0.0  ;;  %v2227_v47 = vadd.f32 %v2221_v38, %v2017_v4 }
 0xe73   : > { %2231 = vadd.xlane.f32.xlu1 %v2230_v40 }
 0xe74   : > { %v2225_v43 = vadd.f32 %v2213_v39, %v2015_v51  ;;  %v2239_v50 = vsel %vm735_vm1, %v2227_v47, 0.0 }
 0xe76   : > { %v2233_v44 = vsel %vm735_vm1, %v2225_v43, 0.0 }
 0xe77   : > { %2234 = vadd.xlane.f32.xlu0 %v2233_v44  ;;  %2237 = vadd.xlane.f32.xlu1 %v2236_v45 }
 0xe7b   : > { %2240 = vadd.xlane.f32.xlu0 %v2239_v50 }
 0xefc   : > { %v2232_v52 = vpop.xlane.xlu1 %2231 }
 0xefd   : > { %v2242_v53 = vmul.f32 0.03125, %v2232_v52 }
 0xeff   : > { %v2246_v34 = vsub.f32 %v2224_v35, %v2242_v53 }
 0xf00   : > { %v2235_v32 = vpop.xlane.xlu0 %2234  ;;  %v2238_v54 = vpop.xlane.xlu1 %2237 }
 0xf01   : > { %v2243_v55 = vmul.f32 0.03125, %v2235_v32  ;;  %v2244_v56 = vmul.f32 0.03125, %v2238_v54  ;;  %v2250_v29 = vmul.f32 %v2246_v34, %v2246_v34 }
 0xf03   : > { %v2247_v58 = vsub.f32 %v2225_v43, %v2243_v55  ;;  %v2248_v59 = vsub.f32 %v2226_v41, %v2244_v56  ;;  %v2254_v61 = vsel %vm735_vm1, %v2250_v29, 0.0 }
 0xf04   : > { %v2241_v62 = vpop.xlane.xlu0 %2240  ;;  %2255 = vadd.xlane.f32.xlu1 %v2254_v61 }
 0xf05   : > { %v2245_v63 = vmul.f32 0.03125, %v2241_v62  ;;  %v2251_v0 = vmul.f32 %v2247_v58, %v2247_v58  ;;  %v2252_v42 = vmul.f32 %v2248_v59, %v2248_v59 }
 0xf07   : > { %v2249_v36 = vsub.f32 %v2227_v47, %v2245_v63  ;;  %v2257_v1 = vsel %vm735_vm1, %v2251_v0, 0.0  ;;  %v2260_v2 = vsel %vm735_vm1, %v2252_v42, 0.0 }
 0xf08   : > { %2258 = vadd.xlane.f32.xlu0 %v2257_v1  ;;  %2261 = vadd.xlane.f32.xlu1 %v2260_v2 }
 0xf09   : > { %v2253_v21 = vmul.f32 %v2249_v36, %v2249_v36 }
 0xf0b   : > { %v2263_v3 = vsel %vm735_vm1, %v2253_v21, 0.0 }
 0xf0c   : > { %2264 = vadd.xlane.f32.xlu0 %v2263_v3 }
 0xf8d   : > { %v2256_v46 = vpop.xlane.xlu1 %2255 }
 0xf8e   : > { %v2266_v48 = vmul.f32 0.03125, %v2256_v46 }
 0xf90   : > { %v2270_v49 = vadd.f32 1e-05, %v2266_v48 }
 0xf91   : > { %v2259_v51 = vpop.xlane.xlu0 %2258  ;;  %v2262_v23 = vpop.xlane.xlu1 %2261 }
 0xf92   : > { %3010 = vrsqrt.f32 %v2270_v49  ;;  %v2267_v57 = vmul.f32 0.03125, %v2259_v51  ;;  %v2268_v60 = vmul.f32 0.03125, %v2262_v23 }
 0xf94   : > { %v2271_v4 = vadd.f32 1e-05, %v2267_v57  ;;  %v2272_v5 = vadd.f32 1e-05, %v2268_v60 }
 0xf95   : > { %v2265_v6 = vpop.xlane.xlu0 %2264 }
 0xf96   : > { %3012 = vrsqrt.f32 %v2271_v4  ;;  %v2269_v7 = vmul.f32 0.03125, %v2265_v6 }
 0xf97   : > { %3014 = vrsqrt.f32 %v2272_v5 }
 0xf98   : > { %v2273_v8 = vadd.f32 1e-05, %v2269_v7 }
 0xf9a   : > { %3016 = vrsqrt.f32 %v2273_v8 }
 0xf9f   : > { %v3011_v9 = vpop.eup %3010 }
 0xfa0   : > { %v2278_v11 = vmul.f32 %v3011_v9, %v2246_v34 }
 0xfa2   : > { %v2288_v14 = vmul.f32 %v2625_v10, %v2278_v11 }
 0xfa3   : > { %v3013_v15 = vpop.eup %3012 }
 0xfa4   : > { %v3015_v16 = vpop.eup %3014  ;;  %v2298_v12 = vadd.f32 %v2626_v13, %v2288_v14  ;;  %v2279_v17 = vmul.f32 %v3013_v15, %v2247_v58 }
 0xfa5   : > { %v2280_v18 = vmul.f32 %v3015_v16, %v2248_v59 }
 0xfa6   : > { %2302 = vst.msk [vmem:[#allocation2] sm:$0xff] %vm735_vm1, %v2298_v12  ;;  %v2289_v19 = vmul.f32 %v2625_v10, %v2279_v17 }
 0xfa7   : > { %v3017_v20 = vpop.eup %3016  ;;  %v2290_v22 = vmul.f32 %v2625_v10, %v2280_v18 }
 0xfa8   : > { %v2299_v24 = vadd.f32 %v2626_v13, %v2289_v19  ;;  %v2281_v25 = vmul.f32 %v3017_v20, %v2249_v36 }
 0xfa9   : > { %v2300_v26 = vadd.f32 %v2626_v13, %v2290_v22 }
 0xfaa   : > { %2303 = vst.msk [vmem:[#allocation2 + $0x8] sm:$0xff] %vm735_vm1, %v2299_v24  ;;  %v2291_v27 = vmul.f32 %v2625_v10, %v2281_v25  ;;  %2309 = sbr.rel (%p2627_p6) target bundleno = 4223 (0x107f), region = 88 }
 0xfab   : > { %2304 = vst.msk [vmem:[#allocation2 + $0x10] sm:$0xff] %vm735_vm1, %v2300_v26 }
 0xfac   : > { %v2301_v28 = vadd.f32 %v2626_v13, %v2291_v27 }
 0xfae   : > { %2305 = vst.msk [vmem:[#allocation2 + $0x18] sm:$0xff] %vm735_vm1, %v2301_v28 }
 0xfaf   : > { %v3022_v30 = vld [vmem:[%s3643_s27 + $0x8] sm:$0xff]   ;;  %v2314_v31 = vpack.c.bf16 %v2298_v12, %v2298_v12  ;;  %v2315_v33 = vpack.c.bf16 %v2300_v26, %v2300_v26  ;;  %v3092_v35 = vmov 0.0   ;;  %v3023_v37 = vld [vmem:[%s3643_s27] sm:$0xff]   ;;  %vm3093_vm7 = vmmov 0  }
 0xfb0   : > { %2837 = vmatprep.subr.bf16.mxu0 %v3092_v35  ;;  %2841 = vmatprep.mubr.msk.bf16.mxu0 %vm3093_vm7, %v3092_v35  ;;  %vm2328_vm8 = vcmask 1041409   ;;  %v2628_v44 = vld [vmem:[%s3644_s14] ss:$0 sm:$0xff] }
 0xfb1   : > { %2838 = vmatpush3.bf16.msra.mxu0 %v3022_v30  ;;  %v2325_v38 = vunpack.c.l.b16 %v2314_v31  ;;  %v2326_v39 = vunpack.c.l.b16 %v2315_v33 }
 0xfb2   : > { %2839 = vmatprep.subr.bf16.mxu0 %v3092_v35 }
 0xfb3   : > { %v2327_v40 = vrot.slane %v2326_v39, 7 }
 0xfb5   : > { %2840 = vmatpush3.bf16.msra.mxu0 %v3023_v37  ;;  %v2329_v41 = vsel %vm2328_vm8, %v2327_v40, %v2325_v38 }
 0xfb6   : > { %v2330_v43 = vpack.c.b16 %v2329_v41, %v2329_v41 }
 0xfb8   : > { %2842 = vmatmul.mubr.msk.bf16.vlgmr.msra.gmra.mxu0 %vm735_vm1, %v2330_v43 }
0x1078   : > { %v2380_v45 = vpop.f32.mrf.mxu0 }
0x1079   : > { %v2381_v47 = vadd.f32 %v2628_v44, %v2380_v45 }
0x107a   : > { %v2843_v50 = vpop.f32.mrf.mxu0 }
0x107b   : > { %2386 = vst [vmem:[#allocation3] sm:$0x3] %v2381_v47 }
0x107c   : > { %v2383_v52 = vpop.f32.mrf.mxu0 }
0x107e   : > { %v2844_v53 = vpop.f32.mrf.mxu0 }
0x107f PF: > { %s3645_s20 = sld [smem:[#allocation7_spill]]  ;;  %s3094_s1 = smov [#allocation3]  }
0x1080   : > { %s2396_s30 = sshll.u32 %s3094_s1, 4  ;;  %s2397_s30 = int_to_ptr.vmem [resolvable:$true] %s2396_s30 }
0x1081   : > { %s3024_s24 = scalar_lea.vmem %s2397_s30, 32  ;;  %p3031_p11 = scmp.lt.s32.totalorder %s2397_s30, %s2397_s30 }
0x1082   : > { %p3025_p8 = scmp.ne.s32.totalorder %s2397_s30, %s3024_s24  ;;  %p3032_p12 = scmp.lt.s32.totalorder %s3024_s24, %s3024_s24 }
0x1084   : > { %p3033_p13 = por %p3032_p12, %p3031_p11 }
0x1085   : > { %s3646_s26 = sadd.s32 4294967295, %s3645_s20  }
0x1086   : > { %p3581_p7 = scmp.eq.s32.totalorder %s3646_s26, 1 }
0x1088   : > { %p3026_p9 = pnand %p3025_p8, %p3581_p7 }
0x108a   : > { %p3027_p10 = pneg %p3026_p9 }
0x108c   : > { %p3034_p0 = pnand %p3033_p13, %p3027_p10 }
0x108e   : > { %3037 = shalt.err (!%p3034_p0)
}
0x108f   : > { %s3648_s0 = sld [smem:[#allocation14_spill]] }
0x1095   : > { %2846 = dma.vmem_to_hbm [thread:$0]  (%p3581_p7), %s2397_s30, 32, %s3648_s0, [#allocation4]  }
0x1096   : > { %3061 = dma.done.wait (%p3581_p7), [#allocation4], 32  }
0x1097   : > { %3063 = vsyncadd (%p3581_p7), [#allocation4], 4294967264 }
0x1098 PF: > { %s3649_s16 = sld [smem:[#allocation7_spill]] }
0x1099   : > { %s3650_s18 = sld [smem:[#allocation6_spill]] }
0x109a   : > { %s3651_s19 = sld [smem:[#allocation8_spill]] }
0x109e   : > { %s26_s20 = sadd.s32 1, %s3649_s16  }
0x109f   : > { %p23_p1 = scmp.ge.s32.totalorder %s26_s20, 4  }
0x10a1   :  { %25 = sbr.rel (!%p23_p1) target bundleno = 9 (0x9), region = 152 }
0x10a6   :  { %2409 = vsyncpa [#allocation4], 1 }
0x10a7   :  { %2411 = vsyncpa [#allocation4 + $0x1], 1 }

</bundles_post_ra>
